<compile_context>
chip_gen: v5e
topology: v5e:2x2
jax: 0.10.0
libtpu: 0.0.40
codegen_flags: <defaults>
</compile_context>

<pallas_src>
import numpy as np
import jax
import jax.numpy as jnp
from jax.experimental import pallas as pl
from jax.experimental.pallas import tpu as pltpu


def _round_up(x, m):
    return (x + m - 1) // m * m


def decoder_kernel(tok_ref, segs_ref, sege_ref, h0_ref, c0_ref, enc_ref,
                   emb_ref, watt_ref, wie_ref, wia_ref, whh_ref, b_ref,
                   wout_ref, bout_ref,
                   logits_ref, hnew_ref, cnew_ref,
                   emb_scratch):
    Bp, Hp = h0_ref.shape            # padded batch (sublane mult 8), padded Hd (128)
    Np = enc_ref.shape[0]            # padded number of encoder nodes

    h0 = h0_ref[...]                               # [Bp, Hp] f32
    c0 = c0_ref[...]                               # [Bp, Hp] f32
    enc = enc_ref[...].astype(jnp.float32)         # bf16 -> f32 once, reused twice

    # ---- embedding: per-row gather; token ids come from SMEM ----
    for b in range(Bp):                            # Bp is small and static
        tok_b = tok_ref[b]                         # scalar id from SMEM
        emb_scratch[pl.ds(b, 1), :] = emb_ref[pl.ds(tok_b, 1), :].astype(jnp.float32)
    embedded = emb_scratch[...]                    # [Bp, Hp]

    # ---- Luong "general" attention; segment mask built in-kernel ----
    proj = jnp.dot(h0, watt_ref[...].astype(jnp.float32),
                   preferred_element_type=jnp.float32)             # [Bp, Hep]
    # scores = proj @ enc^T without materializing the transpose
    scores = jax.lax.dot_general(proj, enc, (((1,), (1,)), ((), ())),
                                 preferred_element_type=jnp.float32)  # [Bp, Np]

    col = jax.lax.broadcasted_iota(jnp.int32, (Bp, Np), 1)
    start = segs_ref[...]                          # [Bp, 1] int32
    end = sege_ref[...]                            # [Bp, 1] int32
    mask = jnp.logical_and(col >= start, col < end)
    maskf = mask.astype(jnp.float32)

    scores = jnp.where(mask, scores, -1e30)
    m = jnp.max(scores, axis=-1, keepdims=True)
    p = jnp.exp(scores - m) * maskf
    denom = jnp.maximum(jnp.sum(p, axis=-1, keepdims=True), 1e-30)  # empty-tree guard
    inv = pl.reciprocal(denom, approx=True)        # EUP slot
    inv = inv * (2.0 - denom * inv)                # one Newton step -> tight precision
    attn = p * inv                                 # [Bp, Np]

    attended = jnp.dot(attn, enc, preferred_element_type=jnp.float32)  # [Bp, Hep]

    # ---- single LSTM step (PyTorch gate order i, f, g, o); no concat ----
    gates = (jnp.dot(embedded, wie_ref[...].astype(jnp.float32),
                     preferred_element_type=jnp.float32)
             + jnp.dot(attended, wia_ref[...].astype(jnp.float32),
                       preferred_element_type=jnp.float32)
             + jnp.dot(h0, whh_ref[...].astype(jnp.float32),
                       preferred_element_type=jnp.float32)
             + b_ref[...])                         # [Bp, 4*Hp]
    # each gate lives in its own 128-lane-aligned column block
    i_g = jax.nn.sigmoid(gates[:, 0 * Hp:1 * Hp])
    f_g = jax.nn.sigmoid(gates[:, 1 * Hp:2 * Hp])
    g_g = jnp.tanh(gates[:, 2 * Hp:3 * Hp])
    o_g = jax.nn.sigmoid(gates[:, 3 * Hp:4 * Hp])
    c_new = f_g * c0 + i_g * g_g
    h_new = o_g * jnp.tanh(c_new)

    # ---- output projection (lane-dense [Bp, 128k] store) ----
    logits = jnp.dot(h_new, wout_ref[...].astype(jnp.float32),
                     preferred_element_type=jnp.float32) + bout_ref[...]

    logits_ref[...] = logits
    hnew_ref[...] = h_new
    cnew_ref[...] = c_new


def pack_params(raw, *, h_enc, h_dec, out_size):
    """Pad / split / cast PyTorch-layout weights for the kernel.

    Each LSTM gate gets its own 128-lane-aligned column block; matmul weights
    are stored as bf16 (f32 accumulation in-kernel); the embedding table stays
    f32 since it is gathered row-by-row.
    """
    Hp = _round_up(h_dec, 128)
    Hep = _round_up(h_enc, 128)
    Op = _round_up(out_size, 128)
    G = 4

    emb = np.asarray(raw["emb"], np.float32)                 # [V, Hd]
    V = emb.shape[0]
    Vp = _round_up(V, 8)
    emb_p = np.zeros((Vp, Hp), np.float32)
    emb_p[:V, :h_dec] = emb

    w_att = np.asarray(raw["w_att"], np.float32)             # [Hd, He]
    w_att_p = np.zeros((Hp, Hep), np.float32)
    w_att_p[:h_dec, :h_enc] = w_att

    w_ih = np.asarray(raw["w_ih"], np.float32)               # [4*Hd, Hd+He]
    w_hh = np.asarray(raw["w_hh"], np.float32)               # [4*Hd, Hd]
    w_ih_emb_t = w_ih[:, :h_dec].T                           # [Hd, 4*Hd]
    w_ih_att_t = w_ih[:, h_dec:].T                           # [He, 4*Hd]
    w_hh_t = w_hh.T                                          # [Hd, 4*Hd]
    bias = np.asarray(raw["b_ih"], np.float32) + np.asarray(raw["b_hh"], np.float32)

    def pad_gate_cols(w_t, in_dim, in_pad):
        out = np.zeros((in_pad, G * Hp), np.float32)
        for g in range(G):
            out[:in_dim, g * Hp:g * Hp + h_dec] = w_t[:in_dim, g * h_dec:(g + 1) * h_dec]
        return out

    wie_p = pad_gate_cols(w_ih_emb_t, h_dec, Hp)
    wia_p = pad_gate_cols(w_ih_att_t, h_enc, Hep)
    whh_p = pad_gate_cols(w_hh_t, h_dec, Hp)
    b_p = np.zeros((1, G * Hp), np.float32)
    for g in range(G):
        b_p[0, g * Hp:g * Hp + h_dec] = bias[g * h_dec:(g + 1) * h_dec]

    w_out = np.asarray(raw["w_out"], np.float32)             # [out, Hd]
    w_out_p = np.zeros((Hp, Op), np.float32)
    w_out_p[:h_dec, :out_size] = w_out.T
    b_out_p = np.zeros((1, Op), np.float32)
    b_out_p[0, :out_size] = np.asarray(raw["b_out"], np.float32)

    bf = jnp.bfloat16
    return {
        "emb": jnp.asarray(emb_p, jnp.float32),
        "w_att": jnp.asarray(w_att_p).astype(bf),
        "w_ih_emb_t": jnp.asarray(wie_p).astype(bf),
        "w_ih_att_t": jnp.asarray(wia_p).astype(bf),
        "w_hh_t": jnp.asarray(whh_p).astype(bf),
        "b": jnp.asarray(b_p, jnp.float32),
        "w_out_t": jnp.asarray(w_out_p).astype(bf),
        "b_out": jnp.asarray(b_out_p, jnp.float32),
        "out_size": out_size,
        "h_dec": h_dec,
        "h_enc": h_enc,
    }


def lstm_attention_decoder(input_token_id, root_hidden_states, root_memory_cells,
                           encoder_output_bf16, tree_sizes, packed):
    """Mirrors LSTMAttentionDecoder.forward (single decode step).

    input_token_id:       [B]        int32
    root_hidden_states:   [1, B, Hd] f32
    root_memory_cells:    [1, B, Hd] f32
    encoder_output_bf16:  [N, He]    bf16
    tree_sizes:           python list of ints, sum == N
    """
    batch = input_token_id.shape[0]
    h_dec = root_hidden_states.shape[-1]
    h_enc = encoder_output_bf16.shape[1]
    num_nodes = encoder_output_bf16.shape[0]
    out_size = packed["out_size"]

    Hp = packed["emb"].shape[1]
    Hep = packed["w_att"].shape[1]
    Op = packed["w_out_t"].shape[1]
    Bp = _round_up(batch, 8)
    Np = _round_up(num_nodes, 128)

    # token ids -> SMEM (clamped so the dynamic row gather can never read OOB VMEM)
    tok_ids = jnp.clip(input_token_id.astype(jnp.int32), 0, packed["emb"].shape[0] - 1)
    tok = jnp.zeros((Bp,), jnp.int32).at[:batch].set(tok_ids)

    # tree segment bounds (tree_sizes is static python) -> tiny [Bp, 1] int32 inputs
    offs = np.zeros(batch + 1, np.int64)
    offs[1:] = np.cumsum(np.asarray(tree_sizes, np.int64))
    seg_start_np = np.zeros((Bp, 1), np.int32)
    seg_end_np = np.zeros((Bp, 1), np.int32)
    seg_start_np[:batch, 0] = offs[:-1]
    seg_end_np[:batch, 0] = offs[1:]
    seg_start = jnp.asarray(seg_start_np)
    seg_end = jnp.asarray(seg_end_np)

    # pad activations: batch -> sublane multiple, features -> 128 lanes
    h0 = jnp.zeros((Bp, Hp), jnp.float32).at[:batch, :h_dec].set(root_hidden_states[0])
    c0 = jnp.zeros((Bp, Hp), jnp.float32).at[:batch, :h_dec].set(root_memory_cells[0])
    enc = jnp.zeros((Np, Hep), jnp.bfloat16).at[:num_nodes, :h_enc].set(encoder_output_bf16)

    smem = pl.BlockSpec(memory_space=pltpu.MemorySpace.SMEM)
    vmem = pl.BlockSpec(memory_space=pltpu.MemorySpace.VMEM)

    logits_p, h_p, c_p = pl.pallas_call(
        decoder_kernel,
        out_shape=(jax.ShapeDtypeStruct((Bp, Op), jnp.float32),
                   jax.ShapeDtypeStruct((Bp, Hp), jnp.float32),
                   jax.ShapeDtypeStruct((Bp, Hp), jnp.float32)),
        in_specs=[smem] + [vmem] * 13,
        out_specs=(vmem, vmem, vmem),
        scratch_shapes=[pltpu.VMEM((Bp, Hp), jnp.float32)],
        compiler_params=pltpu.CompilerParams(vmem_limit_bytes=32 * 1024 * 1024),
    )(tok, seg_start, seg_end, h0, c0, enc,
      packed["emb"], packed["w_att"], packed["w_ih_emb_t"], packed["w_ih_att_t"],
      packed["w_hh_t"], packed["b"], packed["w_out_t"], packed["b_out"])

    logits = logits_p[:batch, :out_size]
    h_new = h_p[:batch, :h_dec][None]
    c_new = c_p[:batch, :h_dec][None]
    return logits, h_new, c_new


def make_ref_params(raw):
    """Reference params: same bf16-rounded weight values the kernel consumes."""
    rd = lambda a: jnp.asarray(a, jnp.float32).astype(jnp.bfloat16).astype(jnp.float32)
    return {
        "emb": jnp.asarray(raw["emb"], jnp.float32),     # kernel keeps the table in f32
        "w_att": rd(raw["w_att"]),
        "w_ih_t": rd(raw["w_ih"]).T,
        "w_hh_t": rd(raw["w_hh"]).T,
        "b": (jnp.asarray(raw["b_ih"], jnp.float32)
              + jnp.asarray(raw["b_hh"], jnp.float32))[None, :],
        "w_out_t": rd(raw["w_out"]).T,
        "b_out": jnp.asarray(raw["b_out"], jnp.float32)[None, :],
    }


def reference(input_token_id, root_hidden_states, root_memory_cells,
              encoder_output_f32, tree_sizes, rparams):
    """Pure-JAX reference of the same forward (for correctness check)."""
    h0 = root_hidden_states[0]
    c0 = root_memory_cells[0]
    h_dec = h0.shape[-1]
    embedded = rparams["emb"][input_token_id]                      # [B, Hd]
    proj = h0 @ rparams["w_att"]                                   # [B, He]
    attended_rows = []
    off = 0
    for b, ts in enumerate(tree_sizes):
        seg = encoder_output_f32[off:off + ts]                     # [ts, He]
        sc = seg @ proj[b]                                         # [ts]
        a = jax.nn.softmax(sc)[:, None]                            # [ts, 1]
        attended_rows.append(jnp.sum(seg * a, axis=0))
        off += ts
    attended = jnp.stack(attended_rows, axis=0)                    # [B, He]
    x = jnp.concatenate([embedded, attended], axis=-1)
    gates = x @ rparams["w_ih_t"] + h0 @ rparams["w_hh_t"] + rparams["b"]
    i_g = jax.nn.sigmoid(gates[:, 0 * h_dec:1 * h_dec])
    f_g = jax.nn.sigmoid(gates[:, 1 * h_dec:2 * h_dec])
    g_g = jnp.tanh(gates[:, 2 * h_dec:3 * h_dec])
    o_g = jax.nn.sigmoid(gates[:, 3 * h_dec:4 * h_dec])
    c_new = f_g * c0 + i_g * g_g
    h_new = o_g * jnp.tanh(c_new)
    logits = h_new @ rparams["w_out_t"] + rparams["b_out"]
    return logits, h_new[None], c_new[None]


if __name__ == "__main__":
    # small shapes consistent with the module
    batch = 4
    h_enc = 32
    h_dec = 32
    out_size = 16          # len(sublabel_to_id) incl. UNK/PAD
    pad_index = 0
    tree_sizes = [8, 4, 6, 6]
    num_nodes = sum(tree_sizes)

    key = jax.random.PRNGKey(0)
    ks = jax.random.split(key, 12)

    def init(k, shape, scale=0.1):
        return (scale * jax.random.normal(k, shape)).astype(jnp.float32)

    # parameters (deterministic, shapes from nn.Embedding / nn.LSTM / nn.Linear)
    emb = init(ks[0], (out_size, h_dec))
    emb = emb.at[pad_index].set(0.0)                       # padding_idx row = 0
    w_att = init(ks[1], (h_dec, h_enc))                    # Luong "general" W
    w_ih = init(ks[2], (4 * h_dec, h_dec + h_enc))         # nn.LSTM weight_ih_l0
    w_hh = init(ks[3], (4 * h_dec, h_dec))                 # nn.LSTM weight_hh_l0
    b_ih = init(ks[4], (4 * h_dec,))
    b_hh = init(ks[5], (4 * h_dec,))
    w_out = init(ks[6], (out_size, h_dec))                 # nn.Linear weight
    b_out = init(ks[7], (out_size,))

    raw = dict(emb=emb, w_att=w_att, w_ih=w_ih, w_hh=w_hh,
               b_ih=b_ih, b_hh=b_hh, w_out=w_out, b_out=b_out)
    packed = pack_params(raw, h_enc=h_enc, h_dec=h_dec, out_size=out_size)

    # inputs
    input_token_id = jax.random.randint(ks[8], (batch,), 0, out_size, jnp.int32)
    root_hidden_states = init(ks[9], (1, batch, h_dec), 1.0)
    root_memory_cells = init(ks[10], (1, batch, h_dec), 1.0)
    encoder_output = init(ks[11], (num_nodes, h_enc), 1.0)
    enc_bf16 = encoder_output.astype(jnp.bfloat16)          # kernel-side dtype

    logits, h_new, c_new = lstm_attention_decoder(
        input_token_id, root_hidden_states, root_memory_cells,
        enc_bf16, tree_sizes, packed)
    jax.block_until_ready((logits, h_new, c_new))

    rparams = make_ref_params(raw)
    ref_logits, ref_h, ref_c = reference(
        input_token_id, root_hidden_states, root_memory_cells,
        enc_bf16.astype(jnp.float32), tree_sizes, rparams)

    assert logits.shape == (batch, out_size)
    assert h_new.shape == (1, batch, h_dec)
    assert c_new.shape == (1, batch, h_dec)
    np.testing.assert_allclose(np.asarray(logits), np.asarray(ref_logits),
                               rtol=1e-4, atol=2e-5)
    np.testing.assert_allclose(np.asarray(h_new), np.asarray(ref_h),
                               rtol=1e-4, atol=2e-5)
    np.testing.assert_allclose(np.asarray(c_new), np.asarray(ref_c),
                               rtol=1e-4, atol=2e-5)

    print("KERNEL_OK")
</pallas_src>

<mosaic_0001>
module attributes {stable_mosaic.version = 11 : i64} {
  func.func @decoder_kernel(%arg0: memref<8xi32, #tpu.memory_space<smem>>, %arg1: memref<8x1xi32, #tpu.memory_space<vmem>>, %arg2: memref<8x1xi32, #tpu.memory_space<vmem>>, %arg3: memref<8x128xf32, #tpu.memory_space<vmem>>, %arg4: memref<8x128xf32, #tpu.memory_space<vmem>>, %arg5: memref<128x128xbf16, #tpu.memory_space<vmem>>, %arg6: memref<16x128xf32, #tpu.memory_space<vmem>>, %arg7: memref<128x128xbf16, #tpu.memory_space<vmem>>, %arg8: memref<128x512xbf16, #tpu.memory_space<vmem>>, %arg9: memref<128x512xbf16, #tpu.memory_space<vmem>>, %arg10: memref<128x512xbf16, #tpu.memory_space<vmem>>, %arg11: memref<1x512xf32, #tpu.memory_space<vmem>>, %arg12: memref<128x128xbf16, #tpu.memory_space<vmem>>, %arg13: memref<1x128xf32, #tpu.memory_space<vmem>>, %arg14: memref<8x128xf32, #tpu.memory_space<vmem>>, %arg15: memref<8x128xf32, #tpu.memory_space<vmem>>, %arg16: memref<8x128xf32, #tpu.memory_space<vmem>>, %arg17: memref<8x128xf32, #tpu.memory_space<vmem>>) attributes {dimension_semantics = [], scalar_prefetch = 0 : i64, scratch_operands = 1 : i64, tpu.core_type = #tpu.core_type<tc>} {
    %c0 = arith.constant 0 : index
    %c0_0 = arith.constant 0 : index
    %0 = vector.load %arg3[%c0, %c0_0] : memref<8x128xf32, #tpu.memory_space<vmem>>, vector<8x128xf32>
    %c0_1 = arith.constant 0 : index
    %c0_2 = arith.constant 0 : index
    %1 = vector.load %arg4[%c0_1, %c0_2] : memref<8x128xf32, #tpu.memory_space<vmem>>, vector<8x128xf32>
    %c0_3 = arith.constant 0 : index
    %c0_4 = arith.constant 0 : index
    %2 = vector.load %arg5[%c0_3, %c0_4] : memref<128x128xbf16, #tpu.memory_space<vmem>>, vector<128x128xbf16>
    %3 = arith.extf %2 : vector<128x128xbf16> to vector<128x128xf32>
    %c0_5 = arith.constant 0 : index
    %4 = memref.load %arg0[%c0_5] : memref<8xi32, #tpu.memory_space<smem>>
    %5 = arith.index_cast %4 : i32 to index
    %c0_6 = arith.constant 0 : index
    %6 = vector.load %arg6[%5, %c0_6] : memref<16x128xf32, #tpu.memory_space<vmem>>, vector<1x128xf32>
    %c0_7 = arith.constant 0 : index
    %c0_8 = arith.constant 0 : index
    %7 = vector.load %arg17[%c0_7, %c0_8] : memref<8x128xf32, #tpu.memory_space<vmem>>, vector<1x128xf32>
    tpu.vector_store %arg17[%c0_7, %c0_8], %6 {strides = array<i32>} : memref<8x128xf32, #tpu.memory_space<vmem>>, vector<1x128xf32>,
    %c1 = arith.constant 1 : index
    %8 = memref.load %arg0[%c1] : memref<8xi32, #tpu.memory_space<smem>>
    %9 = arith.index_cast %8 : i32 to index
    %c0_9 = arith.constant 0 : index
    %10 = vector.load %arg6[%9, %c0_9] : memref<16x128xf32, #tpu.memory_space<vmem>>, vector<1x128xf32>
    %c1_10 = arith.constant 1 : index
    %c0_11 = arith.constant 0 : index
    %11 = vector.load %arg17[%c1_10, %c0_11] : memref<8x128xf32, #tpu.memory_space<vmem>>, vector<1x128xf32>
    tpu.vector_store %arg17[%c1_10, %c0_11], %10 {strides = array<i32>} : memref<8x128xf32, #tpu.memory_space<vmem>>, vector<1x128xf32>,
    %c2 = arith.constant 2 : index
    %12 = memref.load %arg0[%c2] : memref<8xi32, #tpu.memory_space<smem>>
    %13 = arith.index_cast %12 : i32 to index
    %c0_12 = arith.constant 0 : index
    %14 = vector.load %arg6[%13, %c0_12] : memref<16x128xf32, #tpu.memory_space<vmem>>, vector<1x128xf32>
    %c2_13 = arith.constant 2 : index
    %c0_14 = arith.constant 0 : index
    %15 = vector.load %arg17[%c2_13, %c0_14] : memref<8x128xf32, #tpu.memory_space<vmem>>, vector<1x128xf32>
    tpu.vector_store %arg17[%c2_13, %c0_14], %14 {strides = array<i32>} : memref<8x128xf32, #tpu.memory_space<vmem>>, vector<1x128xf32>,
    %c3 = arith.constant 3 : index
    %16 = memref.load %arg0[%c3] : memref<8xi32, #tpu.memory_space<smem>>
    %17 = arith.index_cast %16 : i32 to index
    %c0_15 = arith.constant 0 : index
    %18 = vector.load %arg6[%17, %c0_15] : memref<16x128xf32, #tpu.memory_space<vmem>>, vector<1x128xf32>
    %c3_16 = arith.constant 3 : index
    %c0_17 = arith.constant 0 : index
    %19 = vector.load %arg17[%c3_16, %c0_17] : memref<8x128xf32, #tpu.memory_space<vmem>>, vector<1x128xf32>
    tpu.vector_store %arg17[%c3_16, %c0_17], %18 {strides = array<i32>} : memref<8x128xf32, #tpu.memory_space<vmem>>, vector<1x128xf32>,
    %c4 = arith.constant 4 : index
    %20 = memref.load %arg0[%c4] : memref<8xi32, #tpu.memory_space<smem>>
    %21 = arith.index_cast %20 : i32 to index
    %c0_18 = arith.constant 0 : index
    %22 = vector.load %arg6[%21, %c0_18] : memref<16x128xf32, #tpu.memory_space<vmem>>, vector<1x128xf32>
    %c4_19 = arith.constant 4 : index
    %c0_20 = arith.constant 0 : index
    %23 = vector.load %arg17[%c4_19, %c0_20] : memref<8x128xf32, #tpu.memory_space<vmem>>, vector<1x128xf32>
    tpu.vector_store %arg17[%c4_19, %c0_20], %22 {strides = array<i32>} : memref<8x128xf32, #tpu.memory_space<vmem>>, vector<1x128xf32>,
    %c5 = arith.constant 5 : index
    %24 = memref.load %arg0[%c5] : memref<8xi32, #tpu.memory_space<smem>>
    %25 = arith.index_cast %24 : i32 to index
    %c0_21 = arith.constant 0 : index
    %26 = vector.load %arg6[%25, %c0_21] : memref<16x128xf32, #tpu.memory_space<vmem>>, vector<1x128xf32>
    %c5_22 = arith.constant 5 : index
    %c0_23 = arith.constant 0 : index
    %27 = vector.load %arg17[%c5_22, %c0_23] : memref<8x128xf32, #tpu.memory_space<vmem>>, vector<1x128xf32>
    tpu.vector_store %arg17[%c5_22, %c0_23], %26 {strides = array<i32>} : memref<8x128xf32, #tpu.memory_space<vmem>>, vector<1x128xf32>,
    %c6 = arith.constant 6 : index
    %28 = memref.load %arg0[%c6] : memref<8xi32, #tpu.memory_space<smem>>
    %29 = arith.index_cast %28 : i32 to index
    %c0_24 = arith.constant 0 : index
    %30 = vector.load %arg6[%29, %c0_24] : memref<16x128xf32, #tpu.memory_space<vmem>>, vector<1x128xf32>
    %c6_25 = arith.constant 6 : index
    %c0_26 = arith.constant 0 : index
    %31 = vector.load %arg17[%c6_25, %c0_26] : memref<8x128xf32, #tpu.memory_space<vmem>>, vector<1x128xf32>
    tpu.vector_store %arg17[%c6_25, %c0_26], %30 {strides = array<i32>} : memref<8x128xf32, #tpu.memory_space<vmem>>, vector<1x128xf32>,
    %c7 = arith.constant 7 : index
    %32 = memref.load %arg0[%c7] : memref<8xi32, #tpu.memory_space<smem>>
    %33 = arith.index_cast %32 : i32 to index
    %c0_27 = arith.constant 0 : index
    %34 = vector.load %arg6[%33, %c0_27] : memref<16x128xf32, #tpu.memory_space<vmem>>, vector<1x128xf32>
    %c7_28 = arith.constant 7 : index
    %c0_29 = arith.constant 0 : index
    %35 = vector.load %arg17[%c7_28, %c0_29] : memref<8x128xf32, #tpu.memory_space<vmem>>, vector<1x128xf32>
    tpu.vector_store %arg17[%c7_28, %c0_29], %34 {strides = array<i32>} : memref<8x128xf32, #tpu.memory_space<vmem>>, vector<1x128xf32>,
    %c0_30 = arith.constant 0 : index
    %c0_31 = arith.constant 0 : index
    %36 = vector.load %arg17[%c0_30, %c0_31] : memref<8x128xf32, #tpu.memory_space<vmem>>, vector<8x128xf32>
    %c0_32 = arith.constant 0 : index
    %c0_33 = arith.constant 0 : index
    %37 = vector.load %arg7[%c0_32, %c0_33] : memref<128x128xbf16, #tpu.memory_space<vmem>>, vector<128x128xbf16>
    %38 = arith.extf %37 : vector<128x128xbf16> to vector<128x128xf32>
    %cst = arith.constant dense<0.000000e+00> : vector<8x128xf32>
    %39 = tpu.matmul %0, %38, %cst {dimension_numbers = #tpu.dot_dimension_numbers<[1], [0], [0], [1], [0, 0, 1, 1], [], []>} : vector<8x128xf32>, vector<128x128xf32>, vector<8x128xf32> -> vector<8x128xf32>
    %cst_34 = arith.constant dense<0.000000e+00> : vector<8x128xf32>
    %40 = tpu.matmul %39, %3, %cst_34 {dimension_numbers = #tpu.dot_dimension_numbers<[1], [1], [0], [0], [0, 0, 1, 0], [], []>} : vector<8x128xf32>, vector<128x128xf32>, vector<8x128xf32> -> vector<8x128xf32>
    %41 = tpu.iota {dimensions = array<i32: 1>} : vector<8x128xi32>
    %c0_35 = arith.constant 0 : index
    %c0_36 = arith.constant 0 : index
    %42 = vector.load %arg1[%c0_35, %c0_36] : memref<8x1xi32, #tpu.memory_space<vmem>>, vector<8x1xi32>
    %c0_37 = arith.constant 0 : index
    %c0_38 = arith.constant 0 : index
    %43 = vector.load %arg2[%c0_37, %c0_38] : memref<8x1xi32, #tpu.memory_space<vmem>>, vector<8x1xi32>
    %44 = vector.broadcast %42 : vector<8x1xi32> to vector<8x128xi32>
    %45 = arith.cmpi sge, %41, %44 : vector<8x128xi32>
    %46 = vector.broadcast %43 : vector<8x1xi32> to vector<8x128xi32>
    %47 = arith.cmpi slt, %41, %46 : vector<8x128xi32>
    %48 = arith.andi %45, %47 : vector<8x128xi1>
    %49 = arith.extui %48 : vector<8x128xi1> to vector<8x128xi32>
    %50 = arith.sitofp %49 : vector<8x128xi32> to vector<8x128xf32>
    %cst_39 = arith.constant -1.000000e+30 : f32
    %51 = vector.broadcast %cst_39 : f32 to vector<8x128xf32>
    %52 = arith.select %48, %40, %51 : vector<8x128xi1>, vector<8x128xf32>
    %cst_40 = arith.constant dense<0xFF800000> : vector<8xf32>
    %53 = vector.multi_reduction <maximumf>, %52, %cst_40 [1] : vector<8x128xf32> to vector<8xf32>
    %54 = vector.shape_cast %53 : vector<8xf32> to vector<8x1xf32>
    %55 = vector.broadcast %54 : vector<8x1xf32> to vector<8x128xf32>
    %56 = arith.subf %52, %55 : vector<8x128xf32>
    %57 = math.exp %56 : vector<8x128xf32>
    %58 = arith.mulf %57, %50 : vector<8x128xf32>
    %cst_41 = arith.constant dense<0.000000e+00> : vector<8xf32>
    %59 = vector.multi_reduction <add>, %58, %cst_41 [1] : vector<8x128xf32> to vector<8xf32>
    %60 = vector.shape_cast %59 : vector<8xf32> to vector<8x1xf32>
    %cst_42 = arith.constant 1.000000e-30 : f32
    %61 = vector.broadcast %cst_42 : f32 to vector<8x1xf32>
    %62 = arith.maximumf %60, %61 : vector<8x1xf32>
    %63 = tpu.reciprocal %62 {approx = true} : vector<8x1xf32> -> vector<8x1xf32>
    %64 = arith.mulf %62, %63 : vector<8x1xf32>
    %cst_43 = arith.constant 2.000000e+00 : f32
    %65 = vector.broadcast %cst_43 : f32 to vector<8x1xf32>
    %66 = arith.subf %65, %64 : vector<8x1xf32>
    %67 = arith.mulf %63, %66 : vector<8x1xf32>
    %68 = vector.broadcast %67 : vector<8x1xf32> to vector<8x128xf32>
    %69 = arith.mulf %58, %68 : vector<8x128xf32>
    %cst_44 = arith.constant dense<0.000000e+00> : vector<8x128xf32>
    %70 = tpu.matmul %69, %3, %cst_44 {dimension_numbers = #tpu.dot_dimension_numbers<[1], [0], [0], [1], [0, 0, 1, 1], [], []>} : vector<8x128xf32>, vector<128x128xf32>, vector<8x128xf32> -> vector<8x128xf32>
    %c0_45 = arith.constant 0 : index
    %c0_46 = arith.constant 0 : index
    %71 = vector.load %arg8[%c0_45, %c0_46] : memref<128x512xbf16, #tpu.memory_space<vmem>>, vector<128x512xbf16>
    %72 = arith.extf %71 : vector<128x512xbf16> to vector<128x512xf32>
    %cst_47 = arith.constant dense<0.000000e+00> : vector<8x512xf32>
    %73 = tpu.matmul %36, %72, %cst_47 {dimension_numbers = #tpu.dot_dimension_numbers<[1], [0], [0], [1], [0, 0, 1, 1], [], []>} : vector<8x128xf32>, vector<128x512xf32>, vector<8x512xf32> -> vector<8x512xf32>
    %c0_48 = arith.constant 0 : index
    %c0_49 = arith.constant 0 : index
    %74 = vector.load %arg9[%c0_48, %c0_49] : memref<128x512xbf16, #tpu.memory_space<vmem>>, vector<128x512xbf16>
    %75 = arith.extf %74 : vector<128x512xbf16> to vector<128x512xf32>
    %cst_50 = arith.constant dense<0.000000e+00> : vector<8x512xf32>
    %76 = tpu.matmul %70, %75, %cst_50 {dimension_numbers = #tpu.dot_dimension_numbers<[1], [0], [0], [1], [0, 0, 1, 1], [], []>} : vector<8x128xf32>, vector<128x512xf32>, vector<8x512xf32> -> vector<8x512xf32>
    %77 = arith.addf %73, %76 : vector<8x512xf32>
    %c0_51 = arith.constant 0 : index
    %c0_52 = arith.constant 0 : index
    %78 = vector.load %arg10[%c0_51, %c0_52] : memref<128x512xbf16, #tpu.memory_space<vmem>>, vector<128x512xbf16>
    %79 = arith.extf %78 : vector<128x512xbf16> to vector<128x512xf32>
    %cst_53 = arith.constant dense<0.000000e+00> : vector<8x512xf32>
    %80 = tpu.matmul %0, %79, %cst_53 {dimension_numbers = #tpu.dot_dimension_numbers<[1], [0], [0], [1], [0, 0, 1, 1], [], []>} : vector<8x128xf32>, vector<128x512xf32>, vector<8x512xf32> -> vector<8x512xf32>
    %81 = arith.addf %77, %80 : vector<8x512xf32>
    %c0_54 = arith.constant 0 : index
    %c0_55 = arith.constant 0 : index
    %82 = vector.load %arg11[%c0_54, %c0_55] : memref<1x512xf32, #tpu.memory_space<vmem>>, vector<1x512xf32>
    %83 = vector.broadcast %82 : vector<1x512xf32> to vector<8x512xf32>
    %84 = arith.addf %81, %83 : vector<8x512xf32>
    %85 = vector.extract_strided_slice %84 {offsets = [0, 0], sizes = [8, 128], strides = [1, 1]} : vector<8x512xf32> to vector<8x128xf32>
    %86 = arith.negf %85 : vector<8x128xf32>
    %87 = math.exp %86 : vector<8x128xf32>
    %cst_56 = arith.constant 1.000000e+00 : f32
    %88 = vector.broadcast %cst_56 : f32 to vector<8x128xf32>
    %89 = arith.addf %88, %87 : vector<8x128xf32>
    %90 = arith.divf %88, %89 : vector<8x128xf32>
    %91 = vector.extract_strided_slice %84 {offsets = [0, 128], sizes = [8, 128], strides = [1, 1]} : vector<8x512xf32> to vector<8x128xf32>
    %92 = arith.negf %91 : vector<8x128xf32>
    %93 = math.exp %92 : vector<8x128xf32>
    %cst_57 = arith.constant 1.000000e+00 : f32
    %94 = vector.broadcast %cst_57 : f32 to vector<8x128xf32>
    %95 = arith.addf %94, %93 : vector<8x128xf32>
    %96 = arith.divf %94, %95 : vector<8x128xf32>
    %97 = vector.extract_strided_slice %84 {offsets = [0, 256], sizes = [8, 128], strides = [1, 1]} : vector<8x512xf32> to vector<8x128xf32>
    %98 = math.tanh %97 : vector<8x128xf32>
    %99 = vector.extract_strided_slice %84 {offsets = [0, 384], sizes = [8, 128], strides = [1, 1]} : vector<8x512xf32> to vector<8x128xf32>
    %100 = arith.negf %99 : vector<8x128xf32>
    %101 = math.exp %100 : vector<8x128xf32>
    %cst_58 = arith.constant 1.000000e+00 : f32
    %102 = vector.broadcast %cst_58 : f32 to vector<8x128xf32>
    %103 = arith.addf %102, %101 : vector<8x128xf32>
    %104 = arith.divf %102, %103 : vector<8x128xf32>
    %105 = arith.mulf %96, %1 : vector<8x128xf32>
    %106 = arith.mulf %90, %98 : vector<8x128xf32>
    %107 = arith.addf %105, %106 : vector<8x128xf32>
    %108 = math.tanh %107 : vector<8x128xf32>
    %109 = arith.mulf %104, %108 : vector<8x128xf32>
    %c0_59 = arith.constant 0 : index
    %c0_60 = arith.constant 0 : index
    %110 = vector.load %arg12[%c0_59, %c0_60] : memref<128x128xbf16, #tpu.memory_space<vmem>>, vector<128x128xbf16>
    %111 = arith.extf %110 : vector<128x128xbf16> to vector<128x128xf32>
    %cst_61 = arith.constant dense<0.000000e+00> : vector<8x128xf32>
    %112 = tpu.matmul %109, %111, %cst_61 {dimension_numbers = #tpu.dot_dimension_numbers<[1], [0], [0], [1], [0, 0, 1, 1], [], []>} : vector<8x128xf32>, vector<128x128xf32>, vector<8x128xf32> -> vector<8x128xf32>
    %c0_62 = arith.constant 0 : index
    %c0_63 = arith.constant 0 : index
    %113 = vector.load %arg13[%c0_62, %c0_63] : memref<1x128xf32, #tpu.memory_space<vmem>>, vector<1x128xf32>
    %114 = vector.broadcast %113 : vector<1x128xf32> to vector<8x128xf32>
    %115 = arith.addf %112, %114 : vector<8x128xf32>
    %c0_64 = arith.constant 0 : index
    %c0_65 = arith.constant 0 : index
    %116 = vector.load %arg14[%c0_64, %c0_65] : memref<8x128xf32, #tpu.memory_space<vmem>>, vector<8x128xf32>
    tpu.vector_store %arg14[%c0_64, %c0_65], %115 {strides = array<i32>} : memref<8x128xf32, #tpu.memory_space<vmem>>, vector<8x128xf32>,
    %c0_66 = arith.constant 0 : index
    %c0_67 = arith.constant 0 : index
    %117 = vector.load %arg15[%c0_66, %c0_67] : memref<8x128xf32, #tpu.memory_space<vmem>>, vector<8x128xf32>
    tpu.vector_store %arg15[%c0_66, %c0_67], %109 {strides = array<i32>} : memref<8x128xf32, #tpu.memory_space<vmem>>, vector<8x128xf32>,
    %c0_68 = arith.constant 0 : index
    %c0_69 = arith.constant 0 : index
    %118 = vector.load %arg16[%c0_68, %c0_69] : memref<8x128xf32, #tpu.memory_space<vmem>>, vector<8x128xf32>
    tpu.vector_store %arg16[%c0_68, %c0_69], %107 {strides = array<i32>} : memref<8x128xf32, #tpu.memory_space<vmem>>, vector<8x128xf32>,
    return
  }
}

</mosaic_0001>

<bundles_post_ra>
// kernel: tpu_custom_call.1
= control target key start
LH: loop header
LB: loop body
LE: loop exit
PB: predicated region body
PF: predicated region fallthrough
CT: control target
= control target key end

     0   :  { %s2137_s0 = inlined_call_operand.hbm [shape: s32[8], index: 0, kind: input, shape index: {}]   ;;  %s2138_s1 = inlined_call_operand.vmem [shape: s32[8,1], index: 1, kind: input, shape index: {}]   ;;  %s2139_s2 = inlined_call_operand.vmem [shape: s32[8,1], index: 2, kind: input, shape index: {}]   ;;  %s2140_s3 = inlined_call_operand.hbm [shape: f32[8,128], index: 3, kind: input, shape index: {}]   ;;  %s2141_s4 = inlined_call_operand.hbm [shape: f32[8,128], index: 4, kind: input, shape index: {}]   ;;  %s2142_s5 = inlined_call_operand.hbm [shape: bf16[128,128], index: 5, kind: input, shape index: {}]   ;;  %s2143_s6 = inlined_call_operand.vmem [shape: f32[16,128], index: 6, kind: input, shape index: {}]   ;;  %s2144_s7 = inlined_call_operand.hbm [shape: bf16[128,128], index: 7, kind: input, shape index: {}]   ;;  %s2145_s8 = inlined_call_operand.hbm [shape: bf16[128,512], index: 8, kind: input, shape index: {}]   ;;  %s2146_s9 = inlined_call_operand.hbm [shape: bf16[128,512], index: 9, kind: input, shape index: {}]   ;;  %s2147_s10 = inlined_call_operand.hbm [shape: bf16[128,512], index: 10, kind: input, shape index: {}]   ;;  %s2148_s11 = inlined_call_operand.vmem [shape: f32[1,512], index: 11, kind: input, shape index: {}]   ;;  %s2149_s12 = inlined_call_operand.hbm [shape: bf16[128,128], index: 12, kind: input, shape index: {}]   ;;  %s2150_s13 = inlined_call_operand.vmem [shape: f32[1,128], index: 13, kind: input, shape index: {}]   ;;  %s2151_s14 = inlined_call_operand.hbm [shape: f32[8,128], index: 14, kind: output, shape index: {0}]   ;;  %s2152_s15 = inlined_call_operand.hbm [shape: f32[8,128], index: 15, kind: output, shape index: {1}]   ;;  %s2153_s16 = inlined_call_operand.hbm [shape: f32[8,128], index: 16, kind: output, shape index: {2}]  }
   0x1   :  { %2154 = sst [smem:[#allocation31_spill]] %s2137_s0 }
   0x2   :  { %22 = vsyncpa [#allocation6], 0 }
   0x3   :  { %23 = vsyncpa [#allocation4], 0 }
   0x4   :  { %24 = vsyncpa [#allocation9], 0 }
   0x5   :  { %25 = vsyncpa [#allocation12], 0 }
   0x6   :  { %26 = vsyncpa [#allocation15], 0 }
   0x7   :  { %27 = vsyncpa [#allocation18], 0 }
   0x8   :  { %28 = vsyncpa [#allocation5], 0  ;;  %s59_s23 = sshll.u32 %s2141_s4, 4  ;;  %s60_s23 = int_to_ptr.hbm [resolvable:$true] %s59_s23 }
   0x9   :  { %29 = vsyncpa [#allocation21], 0  ;;  %s1565_s24 = smov [#allocation8]   ;;  %s84_s28 = sshll.u32 %s2144_s7, 4  ;;  %s85_s28 = int_to_ptr.hbm [resolvable:$true] %s84_s28 }
   0xa   :  { %s61_s25 = sshll.u32 %s1565_s24, 4  ;;  %s1566_s29 = smov [#allocation11]   ;;  %s62_s25 = int_to_ptr.vmem [resolvable:$true] %s61_s25 }
   0xb   :  { %64 = dma.hbm_to_vmem [thread:$0]  %s60_s23, 128, %s62_s25, [#allocation9]  }
   0xc   :  { %s86_s30 = sshll.u32 %s1566_s29, 4  ;;  %s1567_s0 = smov 64   ;;  %s87_s30 = int_to_ptr.vmem [resolvable:$true] %s86_s30 }
   0xd   :  { %s1568_s17 = smov 4   ;;  %s110_s19 = sshll.u32 %s2146_s9, 4  ;;  %s111_s19 = int_to_ptr.hbm [resolvable:$true] %s110_s19 }
   0xe   :  { %92 = dma.hbm_to_vmem [thread:$0]  %s85_s28, 1024, %s87_s30, [#allocation12], %s1567_s0, %s1567_s0, %s1568_s17  }
   0xf   :  { %s1569_s20 = smov [#allocation14]   ;;  %s2155_s23 = sld [smem:[#allocation31_spill]] }
  0x10   :  { %s112_s21 = sshll.u32 %s1569_s20, 4  ;;  %s1570_s25 = smov 256   ;;  %s113_s21 = int_to_ptr.vmem [resolvable:$true] %s112_s21 }
  0x11   :  { %s1571_s26 = smov 16   ;;  %s1572_s27 = smov [#allocation3]  }
  0x12   :  { %118 = dma.hbm_to_vmem [thread:$0]  %s111_s19, 4096, %s113_s21, [#allocation15], %s1570_s25, %s1570_s25, %s1571_s26  }
  0x13   :  { %s48_s9 = sshll.u32 %s2140_s3, 4  ;;  %s1573_s30 = smov [#allocation7]   ;;  %s49_s9 = int_to_ptr.hbm [resolvable:$true] %s48_s9 }
  0x14   :  { %s50_s4 = sshll.u32 %s1573_s30, 4  ;;  %s69_s22 = sshll.u32 %s2142_s5, 4  ;;  %s51_s4 = int_to_ptr.vmem [resolvable:$true] %s50_s4  ;;  %s70_s22 = int_to_ptr.hbm [resolvable:$true] %s69_s22 }
  0x15   :  { %s35_s24 = sshll.u32 %s2155_s23, 4  ;;  %s1574_s7 = smov [#allocation10]   ;;  %s36_s24 = int_to_ptr.hbm [resolvable:$true] %s35_s24 }
  0x16   :  { %38 = dma.hbm_to_smem %s36_s24, 16, %s1572_s27, [#allocation6]  }
  0x17   :  { %53 = dma.hbm_to_vmem [thread:$0]  %s49_s9, 128, %s51_s4, [#allocation4]  }
  0x18   :  { %s71_s23 = sshll.u32 %s1574_s7, 4  ;;  %s97_s24 = sshll.u32 %s2145_s8, 4  ;;  %s72_s23 = int_to_ptr.vmem [resolvable:$true] %s71_s23  ;;  %s98_s24 = int_to_ptr.hbm [resolvable:$true] %s97_s24 }
  0x19   :  { %77 = dma.hbm_to_vmem [thread:$0]  %s70_s22, 1024, %s72_s23, [#allocation9], %s1567_s0, %s1567_s0, %s1568_s17  }
  0x1a   :  { %s123_s28 = sshll.u32 %s2147_s10, 4  ;;  %s1575_s29 = smov [#allocation13]   ;;  %s124_s28 = int_to_ptr.hbm [resolvable:$true] %s123_s28 }
  0x1b   :  { %s99_s5 = sshll.u32 %s1575_s29, 4  ;;  %s1576_s9 = smov [#allocation16]   ;;  %s100_s5 = int_to_ptr.vmem [resolvable:$true] %s99_s5 }
  0x1c   :  { %105 = dma.hbm_to_vmem [thread:$0]  %s98_s24, 4096, %s100_s5, [#allocation12], %s1570_s25, %s1570_s25, %s1571_s26  }
  0x1d   :  { %s125_s8 = sshll.u32 %s1576_s9, 4  ;;  %s138_s18 = sshll.u32 %s2149_s12, 4  ;;  %s126_s8 = int_to_ptr.vmem [resolvable:$true] %s125_s8  ;;  %s139_s18 = int_to_ptr.hbm [resolvable:$true] %s138_s18 }
  0x1e   :  { %131 = dma.hbm_to_vmem [thread:$0]  %s124_s28, 4096, %s126_s8, [#allocation15], %s1570_s25, %s1570_s25, %s1571_s26  }
  0x1f   :  { %s1577_s10 = smov [#allocation17]  }
  0x20   :  { %s140_s20 = sshll.u32 %s1577_s10, 4  ;;  %s141_s20 = int_to_ptr.vmem [resolvable:$true] %s140_s20 }
  0x21   :  { %146 = dma.hbm_to_vmem [thread:$0]  %s139_s18, 1024, %s141_s20, [#allocation18], %s1567_s0, %s1567_s0, %s1568_s17  }
  0x22   :  { %1549 = dma.done.wait [#allocation6], 16  }
  0x23   :  { %1550 = vsyncadd [#allocation6], 4294967280 }
  0x24   :  { %1551 = dma.done.wait [#allocation4], 128  }
  0x25   :  { %1552 = vsyncadd [#allocation4], 4294967168 }
  0x26   :  { %1553 = dma.done.wait [#allocation9], 1152  }
  0x27   :  { %1554 = vsyncadd [#allocation9], 4294966144 }
  0x28   :  { %1555 = dma.done.wait [#allocation12], 5120  }
  0x29   :  { %1556 = vsyncadd [#allocation12], 4294962176 }
  0x2a   :  { %1557 = dma.done.wait [#allocation15], 8192  }
  0x2b   :  { %1558 = vsyncadd [#allocation15], 4294959104 }
  0x2c   :  { %1559 = dma.done.wait [#allocation18], 1024  }
  0x2d   :  { %1560 = vsyncadd [#allocation18], 4294966272 }
  0x2e   :  { %185 = sfence }
  0x2f   :  { %v1224_v0 = vld [vmem:[#allocation11 + $0x38] sm:$0xff]   ;;  %v1223_v1 = vld [vmem:[#allocation11 + $0x30] sm:$0xff]   ;;  %v1222_v6 = vld [vmem:[#allocation11 + $0x28] sm:$0xff]   ;;  %v1578_v43 = vmov 0   ;;  %v325_v54 = vlaneseq  ;;  %v1579_v63 = vmov 0.0   ;;  %s1788_s25 = sld [smem:[#allocation3 + $0x1]] }
  0x30   :  { %v1178_v2 = vunpack.c.h.bf16 %v1224_v0  ;;  %v1177_v3 = vunpack.c.l.bf16 %v1224_v0  ;;  %v1174_v4 = vunpack.c.h.bf16 %v1223_v1  ;;  %v1217_v5 = vld [vmem:[#allocation10 + $0x38] sm:$0xff]   ;;  %v1173_v7 = vunpack.c.l.bf16 %v1223_v1  ;;  %v1216_v11 = vld [vmem:[#allocation10 + $0x30] sm:$0xff]   ;;  %v1221_v12 = vld [vmem:[#allocation11 + $0x20] sm:$0xff]   ;;  %1250 = vset.pattern.permute.xlu0 %v1578_v43  ;;  %s1794_s26 = sld [smem:[#allocation3 + $0x2]]  ;;  %s1061_s28 = sshll.u32 %s2152_s15, 4  ;;  %s1062_s28 = int_to_ptr.hbm [resolvable:$true] %s1061_s28 }
  0x31   :  { %v1146_v8 = vunpack.c.h.bf16 %v1217_v5  ;;  %v1170_v9 = vunpack.c.h.bf16 %v1222_v6  ;;  %v1145_v10 = vunpack.c.l.bf16 %v1217_v5  ;;  %v1169_v13 = vunpack.c.l.bf16 %v1222_v6  ;;  %v1215_v16 = vld [vmem:[#allocation10 + $0x28] sm:$0xff]   ;;  %v1220_v17 = vld [vmem:[#allocation11 + $0x18] sm:$0xff]   ;;  %v1214_v22 = vld [vmem:[#allocation10 + $0x20] sm:$0xff]   ;;  %s1798_s22 = sld [smem:[#allocation3 + $0x3]]  ;;  %s1581_s29 = smov [#allocation22]  }
  0x32   :  { %285 = vmatpush.msra.mxu0 %v1178_v2  ;;  %v1142_v14 = vunpack.c.h.bf16 %v1216_v11  ;;  %v1166_v15 = vunpack.c.h.bf16 %v1221_v12  ;;  %v1141_v18 = vunpack.c.l.bf16 %v1216_v11  ;;  %v1165_v19 = vunpack.c.l.bf16 %v1221_v12  ;;  %v1219_v23 = vld [vmem:[#allocation11 + $0x10] sm:$0xff]   ;;  %v1213_v28 = vld [vmem:[#allocation10 + $0x18] sm:$0xff]   ;;  %v1218_v29 = vld [vmem:[#allocation11 + $0x8] sm:$0xff]   ;;  %s1804_s7 = sld [smem:[#allocation3 + $0x4]] }
  0x33   :  { %305 = vmatpush.xpose.msra.mxu1 %v1146_v8  ;;  %355 = vmatpush.msra.mxu2 %v1146_v8  ;;  %v1138_v20 = vunpack.c.h.bf16 %v1215_v16  ;;  %v1162_v21 = vunpack.c.h.bf16 %v1220_v17  ;;  %v1137_v24 = vunpack.c.l.bf16 %v1215_v16  ;;  %v1161_v25 = vunpack.c.l.bf16 %v1220_v17  ;;  %v1212_v34 = vld [vmem:[#allocation10 + $0x10] sm:$0xff]   ;;  %v1148_v35 = vld [vmem:[#allocation11] sm:$0xff]   ;;  %v1211_v40 = vld [vmem:[#allocation10 + $0x8] sm:$0xff]   ;;  %s1808_s23 = sld [smem:[#allocation3 + $0x5]] }
  0x34   :  { %286 = vmatpush.msra.mxu0 %v1177_v3  ;;  %v1134_v26 = vunpack.c.h.bf16 %v1214_v22  ;;  %v1158_v27 = vunpack.c.h.bf16 %v1219_v23  ;;  %v1133_v30 = vunpack.c.l.bf16 %v1214_v22  ;;  %v1157_v31 = vunpack.c.l.bf16 %v1219_v23  ;;  %v327_v41 = vld [vmem:[%s2138_s1] sm:$0xff]  ;;  %v1716_v46 = vld [vmem:[#allocation7] sm:$0xff]  ;;  %v1116_v47 = vld [vmem:[#allocation10] sm:$0xff]   ;;  %s1814_s19 = sld [smem:[#allocation3 + $0x6]] }
  0x35   :  { %356 = vmatpush.msra.mxu2 %v1145_v10  ;;  %v1130_v32 = vunpack.c.h.bf16 %v1213_v28  ;;  %v1154_v33 = vunpack.c.h.bf16 %v1218_v29  ;;  %v1129_v36 = vunpack.c.l.bf16 %v1213_v28  ;;  %v1153_v37 = vunpack.c.l.bf16 %v1218_v29  ;;  %330 = vperm.xlu0 %1250, %v327_v41   ;;  %v328_v51 = vld [vmem:[%s2139_s2] sm:$0xff]  ;;  %v501_v2 = vld [vmem:[#allocation14 + $0xf0] sm:$0xff]  ;;  %v1725_v3 = vld [vmem:[#allocation14 + $0xf8] sm:$0xff]  ;;  %s1784_s2 = sld [smem:[#allocation3]]  ;;  %s225_s5 = scalar_lea.vmem %s2143_s6, %s1788_s25 }
  0x36   :  { %287 = vmatpush.msra.mxu0 %v1174_v4  ;;  %v1126_v38 = vunpack.c.h.bf16 %v1212_v34  ;;  %v1150_v39 = vunpack.c.h.bf16 %v1148_v35  ;;  %v1125_v42 = vunpack.c.l.bf16 %v1212_v34  ;;  %v1149_v44 = vunpack.c.l.bf16 %v1148_v35  ;;  %v499_v4 = vld [vmem:[#allocation14 + $0xe0] sm:$0xff]  ;;  %v497_v11 = vld [vmem:[#allocation14 + $0xd0] sm:$0xff]  ;;  %v1747_v29 = vld [vmem:[#allocation14 + $0xb8] sm:$0xff]  ;;  %s1818_s21 = sld [smem:[#allocation3 + $0x7]]  ;;  %s229_s30 = scalar_lea.vmem %s2143_s6, %s1794_s26 }
  0x37   :  { %306 = vmatpush.xpose.msra.mxu1 %v1145_v10  ;;  %357 = vmatpush.msra.mxu2 %v1142_v14  ;;  %v1122_v45 = vunpack.c.h.bf16 %v1211_v40  ;;  %v1121_v48 = vunpack.c.l.bf16 %v1211_v40  ;;  %v1118_v49 = vunpack.c.h.bf16 %v1116_v47  ;;  %v1117_v50 = vunpack.c.l.bf16 %v1116_v47  ;;  %v1730_v10 = vld [vmem:[#allocation13 + $0xf0] sm:$0xff]  ;;  %v1736_v16 = vld [vmem:[#allocation13 + $0xe0] sm:$0xff]  ;;  %v1759_v43 = vld [vmem:[#allocation14 + $0x98] sm:$0xff]  ;;  %s233_s10 = scalar_lea.vmem %s2143_s6, %s1798_s22 }
  0x38   :  { %288 = vmatpush.msra.mxu0 %v1173_v7  ;;  %v326_v55 = vand.u32 127, %v325_v54  ;;  %v563_v5 = vunpack.c.l.bf16 %v501_v2  ;;  %v564_v6 = vunpack.c.h.bf16 %v501_v2  ;;  %v565_v7 = vunpack.c.l.bf16 %v1725_v3  ;;  %v495_v17 = vld [vmem:[#allocation14 + $0xc0] sm:$0xff]  ;;  %v489_v40 = vld [vmem:[#allocation14 + $0x90] sm:$0xff]  ;;  %s237_s0 = scalar_lea.vmem %s2143_s6, %s1804_s7 }
  0x39   :  { %358 = vmatpush.msra.mxu2 %v1141_v18  ;;  %v559_v8 = vunpack.c.l.bf16 %v499_v4  ;;  %v560_v12 = vunpack.c.h.bf16 %v499_v4  ;;  %v464_v23 = vunpack.c.h.bf16 %v1736_v16 }
  0x3a   :  { %289 = vmatpush.msra.mxu0 %v1170_v9  ;;  %v1728_v9 = vld [vmem:[#allocation14 + $0xe8] sm:$0xff]  ;;  %567 = vmatpush.msra.mxu3 %v563_v5  ;;  %s245_s22 = scalar_lea.vmem %s2143_s6, %s1814_s19 }
  0x3b   :  { %307 = vmatpush.xpose.msra.mxu1 %v1142_v14  ;;  %359 = vmatpush.msra.mxu2 %v1138_v20  ;;  %v468_v14 = vunpack.c.h.bf16 %v1730_v10  ;;  %v1780_v5 = vld [vmem:[#allocation14 + $0x68] sm:$0xff]  ;;  %s221_s27 = scalar_lea.vmem %s2143_s6, %s1784_s2  ;;  %s241_s2 = scalar_lea.vmem %s2143_s6, %s1808_s23 }
  0x3c   :  { %290 = vmatpush.msra.mxu0 %v1169_v13  ;;  %v561_v13 = vunpack.c.l.bf16 %v1728_v9  ;;  %568 = vmatpush.msra.mxu3 %v559_v8  ;;  %s249_s24 = scalar_lea.vmem %s2143_s6, %s1818_s21 }
  0x3d   :  { %360 = vmatpush.msra.mxu2 %v1137_v24  ;;  %334 = vperm.xlu0 %1250, %v328_v51   ;;  %v1765_v51 = vld [vmem:[#allocation14 + $0x88] sm:$0xff] }
  0x3e   :  { %291 = vmatpush.msra.mxu0 %v1166_v15  ;;  %v1734_v15 = vld [vmem:[#allocation14 + $0xd8] sm:$0xff] }
  0x3f   :  { %308 = vmatpush.xpose.msra.mxu1 %v1141_v18  ;;  %361 = vmatpush.msra.mxu2 %v1134_v26  ;;  %v555_v18 = vunpack.c.l.bf16 %v497_v11  ;;  %v557_v22 = vunpack.c.l.bf16 %v1734_v15 }
  0x40   :  { %292 = vmatpush.msra.mxu0 %v1165_v19  ;;  %v556_v19 = vunpack.c.h.bf16 %v497_v11  ;;  %v481_v11 = vld [vmem:[#allocation14 + $0x50] sm:$0xff] }
  0x41   :  { %362 = vmatpush.msra.mxu2 %v1133_v30  ;;  %569 = vmatpush.msra.mxu3 %v555_v18  ;;  %v529_v18 = vunpack.c.l.bf16 %v1780_v5 }
  0x42   :  { %293 = vmatpush.msra.mxu0 %v1162_v21  ;;  %v1740_v21 = vld [vmem:[#allocation13 + $0xd0] sm:$0xff] }
  0x43   :  { %309 = vmatpush.xpose.msra.mxu1 %v1138_v20  ;;  %363 = vmatpush.msra.mxu2 %v1130_v32  ;;  %v1738_v20 = vld [vmem:[#allocation14 + $0xc8] sm:$0xff]  ;;  %v460_v28 = vunpack.c.h.bf16 %v1740_v21 }
  0x44   :  { %294 = vmatpush.msra.mxu0 %v1161_v25  ;;  %v1744_v25 = vld [vmem:[#allocation13 + $0xc0] sm:$0xff] }
  0x45   :  { %364 = vmatpush.msra.mxu2 %v1129_v36 }
  0x46   :  { %295 = vmatpush.msra.mxu0 %v1158_v27  ;;  %v552_v27 = vunpack.c.h.bf16 %v495_v17 }
  0x47   :  { %310 = vmatpush.xpose.msra.mxu1 %v1137_v24  ;;  %365 = vmatpush.msra.mxu2 %v1126_v38  ;;  %v493_v24 = vld [vmem:[#allocation14 + $0xb0] sm:$0xff] }
  0x48   :  { %296 = vmatpush.msra.mxu0 %v1157_v31  ;;  %v553_v31 = vunpack.c.l.bf16 %v1738_v20  ;;  %v547_v34 = vunpack.c.l.bf16 %v493_v24  ;;  %v548_v35 = vunpack.c.h.bf16 %v493_v24  ;;  %v524_v24 = vunpack.c.h.bf16 %v481_v11 }
  0x49   :  { %366 = vmatpush.msra.mxu2 %v1125_v42 }
  0x4a   :  { %297 = vmatpush.msra.mxu0 %v1154_v33  ;;  %v491_v33 = vld [vmem:[#allocation14 + $0xa0] sm:$0xff] }
  0x4b   :  { %311 = vmatpush.xpose.msra.mxu1 %v1134_v26  ;;  %367 = vmatpush.msra.mxu2 %v1122_v45  ;;  %v551_v26 = vunpack.c.l.bf16 %v495_v17  ;;  %v543_v41 = vunpack.c.l.bf16 %v491_v33  ;;  %v1792_v17 = vld [vmem:[#allocation13 + $0x50] sm:$0xff] }
  0x4c   :  { %298 = vmatpush.msra.mxu0 %v1153_v37  ;;  %v1755_v37 = vld [vmem:[#allocation13 + $0xa0] sm:$0xff] }
  0x4d   :  { %368 = vmatpush.msra.mxu2 %v1121_v48  ;;  %570 = vmatpush.msra.mxu3 %v551_v26  ;;  %v448_v47 = vunpack.c.h.bf16 %v1755_v37  ;;  %v1800_v26 = vld [vmem:[#allocation14 + $0x48] sm:$0xff] }
  0x4e   :  { %299 = vmatpush.msra.mxu0 %v1150_v39 }
  0x4f   :  { %312 = vmatpush.xpose.msra.mxu1 %v1133_v30  ;;  %369 = vmatpush.msra.mxu2 %v1118_v49  ;;  %v1749_v30 = vld [vmem:[#allocation13 + $0xb0] sm:$0xff] }
  0x50   :  { %300 = vmatpush.msra.mxu0 %v1149_v44  ;;  %v452_v39 = vunpack.c.h.bf16 %v1749_v30  ;;  %v1761_v44 = vld [vmem:[#allocation13 + $0x90] sm:$0xff]  ;;  %571 = vmatpush.msra.mxu3 %v547_v34 }
  0x51   :  { %301 = vmatmul.f32.vlgmr.msra.gmra.mxu0 %v1716_v46  ;;  %370 = vmatpush.msra.mxu2 %v1117_v50  ;;  %v444_v54 = vunpack.c.h.bf16 %v1761_v44 }
  0x52   :  { %587 = vmatpush.msrb.mxu0 %v564_v6  ;;  %572 = vmatpush.msra.mxu3 %v543_v41  ;;  %v1782_v6 = vld [vmem:[#allocation13 + $0x60] sm:$0xff] }
  0x53   :  { %313 = vmatpush.xpose.msra.mxu1 %v1130_v32  ;;  %607 = vmatpush.msrb.mxu2 %v565_v7  ;;  %v456_v32 = vunpack.c.h.bf16 %v1744_v25  ;;  %v475_v41 = vld [vmem:[#allocation14 + $0x20] sm:$0xff] }
  0x54   :  { %588 = vmatpush.msrb.mxu0 %v560_v12 }
  0x55   :  { %608 = vmatpush.msrb.mxu2 %v561_v13 }
  0x56   :  { %589 = vmatpush.msrb.mxu0 %v556_v19  ;;  %v432_v19 = vunpack.c.h.bf16 %v1782_v6 }
  0x57   :  { %314 = vmatpush.xpose.msra.mxu1 %v1129_v36  ;;  %v1753_v36 = vld [vmem:[#allocation14 + $0xa8] sm:$0xff]  ;;  %609 = vmatpush.msrb.mxu2 %v557_v22  ;;  %v479_v22 = vld [vmem:[#allocation14 + $0x40] sm:$0xff] }
  0x58   :  { %590 = vmatpush.msrb.mxu0 %v552_v27  ;;  %v1802_v27 = vld [vmem:[#allocation13 + $0x40] sm:$0xff]  ;;  %v520_v34 = vunpack.c.h.bf16 %v479_v22 }
  0x59   :  { %610 = vmatpush.msrb.mxu2 %v553_v31  ;;  %v428_v31 = vunpack.c.h.bf16 %v1792_v17 }
  0x5a   :  { %591 = vmatpush.msrb.mxu0 %v548_v35  ;;  %v1810_v35 = vld [vmem:[#allocation14 + $0x38] sm:$0xff] }
  0x5b   :  { %315 = vmatpush.xpose.msra.mxu1 %v1126_v38  ;;  %v549_v38 = vunpack.c.l.bf16 %v1747_v29 }
  0x5d   :  { %611 = vmatpush.msrb.mxu2 %v549_v38  ;;  %v1812_v38 = vld [vmem:[#allocation13 + $0x30] sm:$0xff] }
  0x5f   :  { %316 = vmatpush.xpose.msra.mxu1 %v1125_v42  ;;  %v544_v42 = vunpack.c.h.bf16 %v491_v33  ;;  %v519_v33 = vunpack.c.l.bf16 %v479_v22  ;;  %v226_v22 = vld [vmem:[%s225_s5] sm:$0x1]  ;;  %s1070_s5 = sshll.u32 %s1581_s29, 4  ;;  %s1071_s5 = int_to_ptr.vmem [resolvable:$true] %s1070_s5 }
  0x60   :  { %227 = vst [vmem:[#allocation2 + $0x1] sm:$0x1] %v226_v22  ;;  %v451_v22 = vunpack.c.l.bf16 %v1749_v30  ;;  %v546_v30 = vunpack.c.h.bf16 %v1753_v36 }
  0x61   :  { %592 = vmatpush.msrb.mxu0 %v544_v42 }
  0x63   :  { %317 = vmatpush.xpose.msra.mxu1 %v1122_v45  ;;  %v545_v45 = vunpack.c.l.bf16 %v1753_v36 }
  0x65   :  { %612 = vmatpush.msrb.mxu2 %v545_v45 }
  0x67   :  { %318 = vmatpush.xpose.msra.mxu1 %v1121_v48  ;;  %v487_v48 = vld [vmem:[#allocation14 + $0x80] sm:$0xff] }
  0x6b   :  { %319 = vmatpush.xpose.msra.mxu1 %v1118_v49  ;;  %v539_v49 = vunpack.c.l.bf16 %v489_v40 }
  0x6d   :  { %573 = vmatpush.msra.mxu3 %v539_v49  ;;  %v1822_v49 = vld [vmem:[#allocation13 + $0x20] sm:$0xff] }
  0x6f   :  { %320 = vmatpush.xpose.msra.mxu1 %v1117_v50  ;;  %v540_v50 = vunpack.c.h.bf16 %v489_v40  ;;  %v424_v40 = vunpack.c.h.bf16 %v1802_v27 }
  0x71   :  { %593 = vmatpush.msrb.mxu0 %v540_v50 }
  0x73   :  { %667 = vmatpush.msrb.mxu1 %v468_v14  ;;  %v1790_v14 = vld [vmem:[#allocation14 + $0x58] sm:$0xff] }
  0x75   :  { %668 = vmatpush.msrb.mxu1 %v464_v23  ;;  %v523_v23 = vunpack.c.l.bf16 %v481_v11  ;;  %v1850_v11 = vld [vmem:[#allocation13 + $0xf8] sm:$0xff] }
  0x77   :  { %669 = vmatpush.msrb.mxu1 %v460_v28  ;;  %v525_v28 = vunpack.c.l.bf16 %v1790_v14 }
  0x79   :  { %670 = vmatpush.msrb.mxu1 %v456_v32  ;;  %v477_v32 = vld [vmem:[#allocation14 + $0x30] sm:$0xff] }
  0x7a   :  { %v515_v45 = vunpack.c.l.bf16 %v477_v32 }
  0x7b   :  { %671 = vmatpush.msrb.mxu1 %v452_v39  ;;  %v521_v39 = vunpack.c.l.bf16 %v1800_v26 }
  0x7d   :  { %672 = vmatpush.msrb.mxu1 %v448_v47  ;;  %v516_v47 = vunpack.c.h.bf16 %v477_v32 }
  0x7f   :  { %673 = vmatpush.msrb.mxu1 %v444_v54  ;;  %v420_v54 = vunpack.c.h.bf16 %v1812_v38 }
  0xa7   :  { %v331_v53 = vpop.permute.xlu0 %330 }
  0xa8   :  { %vm332_vm0 = vcmp.ge.s32.totalorder %v326_v55, %v331_v53  ;;  %v541_v53 = vunpack.c.l.bf16 %v1759_v43 }
  0xaa   :  { %613 = vmatpush.msrb.mxu2 %v541_v53  ;;  %v517_v53 = vunpack.c.l.bf16 %v1810_v35 }
  0xaf   :  { %v335_v56 = vpop.permute.xlu0 %334 }
  0xb0   :  { %vm336_vm1 = vcmp.lt.s32.totalorder %v326_v55, %v335_v56  ;;  %v485_v55 = vld [vmem:[#allocation14 + $0x70] sm:$0xff]  ;;  %v535_v56 = vunpack.c.l.bf16 %v487_v48 }
  0xb1   :  { %vm337_vm2 = vmand %vm332_vm0, %vm336_vm1  ;;  %v531_v2 = vunpack.c.l.bf16 %v485_v55  ;;  %v532_v4 = vunpack.c.h.bf16 %v485_v55  ;;  %v473_v55 = vld [vmem:[#allocation14 + $0x10] sm:$0xff] }
  0xb2   :  { %v1111_v0 = vsel %vm337_vm2, 1.0, %v1579_v63  ;;  %v483_v63 = vld [vmem:[#allocation14 + $0x60] sm:$0xff]  ;;  %574 = vmatpush.msra.mxu3 %v535_v56  ;;  %v511_v56 = vunpack.c.l.bf16 %v475_v41 }
  0xb3   :  { %v527_v12 = vunpack.c.l.bf16 %v483_v63  ;;  %v528_v13 = vunpack.c.h.bf16 %v483_v63  ;;  %v1837_v63 = vld [vmem:[#allocation14 + $0x18] sm:$0xff] }
  0xb4   :  { %575 = vmatpush.msra.mxu3 %v531_v2  ;;  %v471_v2 = vld [vmem:[#allocation14] sm:$0xff] }
  0xb6   :  { %576 = vmatpush.msra.mxu3 %v527_v12 }
  0xb8   :  { %577 = vmatpush.msra.mxu3 %v523_v23  ;;  %v509_v23 = vunpack.c.l.bf16 %v1837_v63 }
  0xba   :  { %578 = vmatpush.msra.mxu3 %v519_v33  ;;  %v504_v33 = vunpack.c.h.bf16 %v471_v2 }
  0xbc   :  { %579 = vmatpush.msra.mxu3 %v515_v45  ;;  %v242_v45 = vld [vmem:[%s241_s2] sm:$0x1] }
  0xbd   :  { %243 = vst [vmem:[#allocation2 + $0x5] sm:$0x1] %v242_v45 }
  0xbe   :  { %580 = vmatpush.msra.mxu3 %v511_v56  ;;  %v250_v56 = vld [vmem:[%s249_s24] sm:$0x1] }
  0xbf   :  { %251 = vst [vmem:[#allocation2 + $0x7] sm:$0x1] %v250_v56  ;;  %v1940_v56 = vld [vmem:[#allocation13 + $0x68] sm:$0xff] }
  0xce   :  { %v302_v52 = vpop.f32.mrf.mxu0 }
  0xcf   :  { %321 = vmatmul.f32.vlgmr.msra.gmra.mxu1 %v302_v52  ;;  %v1767_v52 = vld [vmem:[#allocation13 + $0x80] sm:$0xff] }
 0x14c   :  { %v322_v57 = vpop.f32.mrf.mxu1 }
 0x14d   :  { %v340_v58 = vsel %vm337_vm2, %v322_v57, -1e+30  ;;  %v536_v57 = vunpack.c.h.bf16 %v487_v48  ;;  %v1820_v48 = vld [vmem:[#allocation14 + $0x28] sm:$0xff] }
 0x14e   :  { %341 = vmax.xlane.f32.xlu1 %v340_v58 }
 0x14f   :  { %594 = vmatpush.msrb.mxu0 %v536_v57  ;;  %v512_v57 = vunpack.c.h.bf16 %v475_v41 }
 0x151   :  { %595 = vmatpush.msrb.mxu0 %v532_v4  ;;  %v507_v4 = vunpack.c.l.bf16 %v473_v55 }
 0x153   :  { %596 = vmatpush.msrb.mxu0 %v528_v13  ;;  %581 = vmatpush.msra.mxu3 %v507_v4 }
 0x155   :  { %597 = vmatpush.msrb.mxu0 %v524_v24  ;;  %v503_v24 = vunpack.c.l.bf16 %v471_v2 }
 0x157   :  { %598 = vmatpush.msrb.mxu0 %v520_v34  ;;  %v566_v34 = vunpack.c.h.bf16 %v1725_v3  ;;  %v469_v3 = vunpack.c.l.bf16 %v1850_v11  ;;  %582 = vmatpush.msra.mxu3 %v503_v24  ;;  %v1910_v24 = vld [vmem:[#allocation16 + $0xb0] sm:$0xff] }
 0x159   :  { %599 = vmatpush.msrb.mxu0 %v516_v47  ;;  %627 = vmatpush.msrb.mxu3 %v566_v34  ;;  %v804_v34 = vunpack.c.h.bf16 %v1910_v24 }
 0x15b   :  { %600 = vmatpush.msrb.mxu0 %v512_v57 }
 0x1c1   :  { %v342_v59 = vpop.xlane.xlu1 %341 }
 0x1c2   :  { %v343_v60 = vsub.f32 %v340_v58, %v342_v59  ;;  %v1771_v58 = vld [vmem:[#allocation14 + $0x78] sm:$0xff]  ;;  %v1773_v59 = vld [vmem:[#allocation13 + $0x70] sm:$0xff] }
 0x1c3   :  { %v533_v7 = vunpack.c.l.bf16 %v1771_v58  ;;  %v436_v8 = vunpack.c.h.bf16 %v1773_v59 }
 0x1c4   :  { %v344_v61 = vmul.f32 1.442695, %v343_v60 }
 0x1c6   :  { %1252 = vpow2.f32 %v344_v61  ;;  %v537_v61 = vunpack.c.l.bf16 %v1765_v51 }
 0x1c8   :  { %614 = vmatpush.msrb.mxu2 %v537_v61 }
 0x1ca   :  { %615 = vmatpush.msrb.mxu2 %v533_v7  ;;  %v508_v7 = vunpack.c.h.bf16 %v473_v55  ;;  %v1886_v55 = vld [vmem:[#allocation16 + $0xe0] sm:$0xff] }
 0x1cb   :  { %v816_v4 = vunpack.c.h.bf16 %v1886_v55 }
 0x1cc   :  { %v1253_v62 = vpop.eup %1252  ;;  %616 = vmatpush.msrb.mxu2 %v529_v18  ;;  %v1857_v18 = vld [vmem:[#allocation13] sm:$0xff]  ;;  %601 = vmatpush.msrb.mxu0 %v508_v7  ;;  %v455_v7 = vunpack.c.l.bf16 %v1744_v25  ;;  %v550_v25 = vunpack.c.h.bf16 %v1747_v29 }
 0x1cd   :  { %v1722_v1 = vmul.f32 %v1253_v62, %v1111_v0  ;;  %v440_v62 = vunpack.c.h.bf16 %v1767_v52  ;;  %v408_v47 = vunpack.c.h.bf16 %v1857_v18 }
 0x1ce   :  { %617 = vmatpush.msrb.mxu2 %v525_v28  ;;  %v230_v28 = vld [vmem:[%s229_s30] sm:$0x1]  ;;  %602 = vmatpush.msrb.mxu0 %v504_v33  ;;  %v1918_v33 = vld [vmem:[#allocation16 + $0xa0] sm:$0xff]  ;;  %s1072_s30 = sshll.u32 %s2153_s16, 4  ;;  %s1073_s30 = int_to_ptr.hbm [resolvable:$true] %s1072_s30 }
 0x1cf   :  { %347 = vadd.xlane.f32.xlu1 %v1722_v1  ;;  %674 = vmatpush.msrb.mxu1 %v440_v62  ;;  %v513_v62 = vunpack.c.l.bf16 %v1820_v48  ;;  %231 = vst [vmem:[#allocation2 + $0x2] sm:$0x1] %v230_v28  ;;  %v800_v45 = vunpack.c.h.bf16 %v1918_v33 }
 0x1d0   :  { %618 = vmatpush.msrb.mxu2 %v521_v39  ;;  %v238_v39 = vld [vmem:[%s237_s0] sm:$0x1]  ;;  %s1050_s0 = sshll.u32 %s2151_s14, 4  ;;  %s1051_s0 = int_to_ptr.hbm [resolvable:$true] %s1050_s0 }
 0x1d1   :  { %675 = vmatpush.msrb.mxu1 %v436_v8  ;;  %v1848_v8 = vld [vmem:[#allocation14 + $0x8] sm:$0xff]  ;;  %239 = vst [vmem:[#allocation2 + $0x4] sm:$0x1] %v238_v39  ;;  %v443_v39 = vunpack.c.l.bf16 %v1761_v44  ;;  %v538_v44 = vunpack.c.h.bf16 %v1765_v51 }
 0x1d2   :  { %619 = vmatpush.msrb.mxu2 %v517_v53  ;;  %v505_v41 = vunpack.c.l.bf16 %v1848_v8  ;;  %v562_v53 = vunpack.c.h.bf16 %v1728_v9  ;;  %v1892_v9 = vld [vmem:[#allocation13 + $0xc8] sm:$0xff] }
 0x1d3   :  { %676 = vmatpush.msrb.mxu1 %v432_v19  ;;  %v222_v19 = vld [vmem:[%s221_s27] sm:$0x1] }
 0x1d4   :  { %223 = vst [vmem:[#allocation2] sm:$0x1] %v222_v19  ;;  %620 = vmatpush.msrb.mxu2 %v513_v62  ;;  %v459_v62 = vunpack.c.l.bf16 %v1740_v21  ;;  %628 = vmatpush.msrb.mxu3 %v562_v53  ;;  %v554_v21 = vunpack.c.h.bf16 %v1738_v20  ;;  %v435_v53 = vunpack.c.l.bf16 %v1773_v59  ;;  %v530_v59 = vunpack.c.h.bf16 %v1780_v5 }
 0x1d5   :  { %677 = vmatpush.msrb.mxu1 %v428_v31  ;;  %v234_v31 = vld [vmem:[%s233_s10] sm:$0x1]  ;;  %s1582_s10 = smov [#allocation19]  }
 0x1d6   :  { %235 = vst [vmem:[#allocation2 + $0x3] sm:$0x1] %v234_v31  ;;  %621 = vmatpush.msrb.mxu2 %v509_v23  ;;  %v1908_v23 = vld [vmem:[#allocation13 + $0xa8] sm:$0xff]  ;;  %v447_v31 = vunpack.c.l.bf16 %v1755_v37  ;;  %v542_v37 = vunpack.c.h.bf16 %v1759_v43  ;;  %s1048_s15 = sshll.u32 %s1582_s10, 4  ;;  %s1049_s15 = int_to_ptr.vmem [resolvable:$true] %s1048_s15 }
 0x1d7   :  { %678 = vmatpush.msrb.mxu1 %v424_v40  ;;  %v467_v40 = vunpack.c.l.bf16 %v1730_v10  ;;  %v463_v10 = vunpack.c.l.bf16 %v1736_v16  ;;  %v558_v16 = vunpack.c.h.bf16 %v1734_v15  ;;  %v1902_v15 = vld [vmem:[#allocation16 + $0xc0] sm:$0xff]  ;;  %v449_v29 = vunpack.c.l.bf16 %v1908_v23 }
 0x1d8   :  { %622 = vmatpush.msrb.mxu2 %v505_v41  ;;  %v808_v28 = vunpack.c.h.bf16 %v1902_v15  ;;  %v1926_v41 = vld [vmem:[#allocation16 + $0x90] sm:$0xff] }
 0x1d9   :  { %679 = vmatpush.msrb.mxu1 %v420_v54  ;;  %v1884_v54 = vld [vmem:[#allocation13 + $0xd8] sm:$0xff]  ;;  %647 = vmatpush.msra.mxu0 %v467_v40  ;;  %v1924_v40 = vld [vmem:[#allocation13 + $0x88] sm:$0xff] }
 0x1da   :  { %v461_v2 = vunpack.c.l.bf16 %v1884_v54  ;;  %629 = vmatpush.msrb.mxu3 %v558_v16  ;;  %v441_v43 = vunpack.c.l.bf16 %v1924_v40  ;;  %v1948_v16 = vld [vmem:[#allocation13 + $0x58] sm:$0xff] }
 0x1db   :  { %648 = vmatpush.msra.mxu0 %v463_v10  ;;  %v796_v10 = vunpack.c.h.bf16 %v1926_v41  ;;  %v429_v5 = vunpack.c.l.bf16 %v1948_v16 }
 0x1dc   :  { %630 = vmatpush.msrb.mxu3 %v554_v21  ;;  %v1956_v21 = vld [vmem:[#allocation13 + $0x48] sm:$0xff] }
 0x1dd   :  { %649 = vmatpush.msra.mxu0 %v459_v62  ;;  %v431_v62 = vunpack.c.l.bf16 %v1782_v6  ;;  %v526_v6 = vunpack.c.h.bf16 %v1790_v14  ;;  %v425_v14 = vunpack.c.l.bf16 %v1956_v21 }
 0x1de   :  { %631 = vmatpush.msrb.mxu3 %v550_v25  ;;  %v1964_v25 = vld [vmem:[#allocation13 + $0x38] sm:$0xff] }
 0x1df   :  { %650 = vmatpush.msra.mxu0 %v455_v7  ;;  %v427_v7 = vunpack.c.l.bf16 %v1792_v17  ;;  %v522_v17 = vunpack.c.h.bf16 %v1800_v26  ;;  %v421_v26 = vunpack.c.l.bf16 %v1964_v25 }
 0x1e0   :  { %632 = vmatpush.msrb.mxu3 %v546_v30  ;;  %v1972_v30 = vld [vmem:[#allocation13 + $0x28] sm:$0xff] }
 0x1e1   :  { %651 = vmatpush.msra.mxu0 %v451_v22  ;;  %v423_v22 = vunpack.c.l.bf16 %v1802_v27  ;;  %v518_v27 = vunpack.c.h.bf16 %v1810_v35 }
 0x1e2   :  { %633 = vmatpush.msrb.mxu3 %v542_v37  ;;  %v1979_v37 = vld [vmem:[#allocation13 + $0x18] sm:$0xff] }
 0x1e3   :  { %652 = vmatpush.msra.mxu0 %v447_v31  ;;  %v419_v31 = vunpack.c.l.bf16 %v1812_v38  ;;  %v415_v38 = vunpack.c.l.bf16 %v1822_v49 }
 0x1e4   :  { %634 = vmatpush.msrb.mxu3 %v538_v44  ;;  %v510_v44 = vunpack.c.h.bf16 %v1837_v63  ;;  %v1996_v63 = vld [vmem:[#allocation16 + $0x10] sm:$0xff] }
 0x1e5   :  { %653 = vmatpush.msra.mxu0 %v443_v39  ;;  %v514_v39 = vunpack.c.h.bf16 %v1820_v48 }
 0x242   :  { %v1775_v60 = vpop.xlane.xlu1 %347 }
 0x243   :  { %v349_v0 = vmax.f32 %v1775_v60, 1e-30  ;;  %v1826_v60 = vld [vmem:[#allocation13 + $0x10] sm:$0xff] }
 0x244   :  { %v412_v13 = vunpack.c.h.bf16 %v1826_v60  ;;  %v411_v48 = vunpack.c.l.bf16 %v1826_v60  ;;  %v1994_v60 = vld [vmem:[#allocation13 + $0x8] sm:$0xff] }
 0x245   :  { %1254 = vrcp.f32 %v349_v0 }
 0x24b   :  { %v1255_v42 = vpop.eup %1254 }
 0x24c   :  { %v351_v50 = vmul.f32 %v1255_v42, %v349_v0  ;;  %v416_v0 = vunpack.c.h.bf16 %v1822_v49  ;;  %v413_v49 = vunpack.c.l.bf16 %v1979_v37 }
 0x24e   :  { %v352_v61 = vsub.f32 2.0, %v351_v50  ;;  %680 = vmatpush.msrb.mxu1 %v416_v0  ;;  %v246_v50 = vld [vmem:[%s245_s22] sm:$0x1]  ;;  %v1894_v0 = vld [vmem:[#allocation16 + $0xd0] sm:$0xff] }
 0x24f   :  { %247 = vst [vmem:[#allocation2 + $0x6] sm:$0x1] %v246_v50  ;;  %v812_v19 = vunpack.c.h.bf16 %v1894_v0  ;;  %v1934_v50 = vld [vmem:[#allocation16 + $0x80] sm:$0xff] }
 0x250   :  { %v353_v12 = vmul.f32 %v1255_v42, %v352_v61  ;;  %v1876_v42 = vld [vmem:[#allocation13 + $0xe8] sm:$0xff]  ;;  %681 = vmatpush.msrb.mxu1 %v412_v13  ;;  %v457_v13 = vunpack.c.l.bf16 %v1892_v9 }
 0x251   :  { %v465_v57 = vunpack.c.l.bf16 %v1876_v42 }
 0x252   :  { %v354_v32 = vmul.f32 %v353_v12, %v1722_v1  ;;  %v1878_v1 = vld [vmem:[#allocation16 + $0xf0] sm:$0xff]  ;;  %682 = vmatpush.msrb.mxu1 %v408_v47  ;;  %v1900_v12 = vld [vmem:[#allocation13 + $0xb8] sm:$0xff] }
 0x253   :  { %v820_v61 = vunpack.c.h.bf16 %v1878_v1  ;;  %v453_v20 = vunpack.c.l.bf16 %v1900_v12  ;;  %v1932_v47 = vld [vmem:[#allocation13 + $0x78] sm:$0xff] }
 0x254   :  { %371 = vmatmul.f32.vlgmr.msra.gmra.mxu2 %v354_v32  ;;  %v1916_v32 = vld [vmem:[#allocation13 + $0x98] sm:$0xff]  ;;  %v437_v51 = vunpack.c.l.bf16 %v1932_v47 }
 0x255   :  { %687 = vmatpush.msra.mxu2 %v469_v3  ;;  %843 = vmatpush.msra.mxu1 %v820_v61  ;;  %v445_v36 = vunpack.c.l.bf16 %v1916_v32  ;;  %v439_v3 = vunpack.c.l.bf16 %v1767_v52  ;;  %v534_v52 = vunpack.c.h.bf16 %v1771_v58  ;;  %v792_v61 = vunpack.c.h.bf16 %v1934_v50 }
 0x256   :  { %v433_v58 = vunpack.c.l.bf16 %v1940_v56  ;;  %v1982_v35 = vld [vmem:[#allocation2] sm:$0xff] }
 0x257   :  { %688 = vmatpush.msra.mxu2 %v465_v57  ;;  %844 = vmatpush.msra.mxu1 %v816_v4  ;;  %v1942_v57 = vld [vmem:[#allocation16 + $0x70] sm:$0xff] }
 0x258   :  { %654 = vmatpush.msra.mxu0 %v439_v3  ;;  %v788_v4 = vunpack.c.h.bf16 %v1942_v57  ;;  %635 = vmatpush.msrb.mxu3 %v534_v52  ;;  %v409_v52 = vunpack.c.l.bf16 %v1994_v60 }
 0x259   :  { %689 = vmatpush.msra.mxu2 %v461_v2  ;;  %845 = vmatpush.msra.mxu1 %v812_v19  ;;  %v1950_v2 = vld [vmem:[#allocation16 + $0x60] sm:$0xff] }
 0x25a   :  { %655 = vmatpush.msra.mxu0 %v435_v53  ;;  %v784_v19 = vunpack.c.h.bf16 %v1950_v2  ;;  %636 = vmatpush.msrb.mxu3 %v530_v59  ;;  %v506_v53 = vunpack.c.h.bf16 %v1848_v8  ;;  %v470_v59 = vunpack.c.h.bf16 %v1850_v11  ;;  %v819_v8 = vunpack.c.l.bf16 %v1878_v1 }
 0x25b   :  { %690 = vmatpush.msra.mxu2 %v457_v13  ;;  %846 = vmatpush.msra.mxu1 %v808_v28  ;;  %v1958_v13 = vld [vmem:[#allocation16 + $0x50] sm:$0xff]  ;;  %v462_v11 = vunpack.c.h.bf16 %v1884_v54  ;;  %v811_v1 = vunpack.c.l.bf16 %v1894_v0  ;;  %v454_v54 = vunpack.c.h.bf16 %v1900_v12  ;;  %v803_v0 = vunpack.c.l.bf16 %v1910_v24 }
 0x25c   :  { %656 = vmatpush.msra.mxu0 %v431_v62  ;;  %v780_v28 = vunpack.c.h.bf16 %v1958_v13  ;;  %637 = vmatpush.msrb.mxu3 %v526_v6  ;;  %v2005_v62 = vld [vmem:[#allocation16 + $0xf8] sm:$0xff]  ;;  %v466_v6 = vunpack.c.h.bf16 %v1876_v42  ;;  %v446_v24 = vunpack.c.h.bf16 %v1916_v32  ;;  %v438_v32 = vunpack.c.h.bf16 %v1932_v47 }
 0x25d   :  { %691 = vmatpush.msra.mxu2 %v453_v20  ;;  %847 = vmatpush.msra.mxu1 %v804_v34  ;;  %v1966_v20 = vld [vmem:[#allocation16 + $0x40] sm:$0xff]  ;;  %v1976_v34 = vld [vmem:[#allocation16 + $0x30] sm:$0xff]  ;;  %v430_v47 = vunpack.c.h.bf16 %v1948_v16  ;;  %v422_v16 = vunpack.c.h.bf16 %v1964_v25  ;;  %v414_v25 = vunpack.c.h.bf16 %v1979_v37 }
 0x25e   :  { %657 = vmatpush.msra.mxu0 %v427_v7  ;;  %638 = vmatpush.msrb.mxu3 %v522_v17  ;;  %v772_v3 = vunpack.c.h.bf16 %v1976_v34  ;;  %v458_v17 = vunpack.c.h.bf16 %v1892_v9 }
 0x25f   :  { %692 = vmatpush.msra.mxu2 %v449_v29  ;;  %848 = vmatpush.msra.mxu1 %v800_v45  ;;  %v776_v29 = vunpack.c.h.bf16 %v1966_v20  ;;  %v1985_v45 = vld [vmem:[#allocation16 + $0x20] sm:$0xff] }
 0x260   :  { %658 = vmatpush.msra.mxu0 %v423_v22  ;;  %639 = vmatpush.msrb.mxu3 %v518_v27  ;;  %v2018_v22 = vld [vmem:[#allocation16 + $0xc8] sm:$0xff]  ;;  %v2033_v27 = vld [vmem:[#allocation16 + $0x98] sm:$0xff] }
 0x261   :  { %693 = vmatpush.msra.mxu2 %v445_v36  ;;  %849 = vmatpush.msra.mxu1 %v796_v10  ;;  %v417_v36 = vunpack.c.l.bf16 %v1972_v30  ;;  %v407_v10 = vunpack.c.l.bf16 %v1857_v18  ;;  %v2001_v18 = vld [vmem:[#allocation16] sm:$0xff] }
 0x262   :  { %659 = vmatpush.msra.mxu0 %v419_v31  ;;  %683 = vmatmul.f32.vlgmr.msrb.gmra.mxu1 %v1982_v35  ;;  %v2028_v31 = vld [vmem:[#allocation16 + $0xa8] sm:$0xff] }
 0x263   :  { %694 = vmatpush.msra.mxu2 %v441_v43  ;;  %850 = vmatpush.msra.mxu1 %v792_v61  ;;  %v768_v43 = vunpack.c.h.bf16 %v1985_v45  ;;  %v760_v61 = vunpack.c.h.bf16 %v2001_v18  ;;  %v801_v12 = vunpack.c.l.bf16 %v2028_v31 }
 0x264   :  { %640 = vmatpush.msrb.mxu3 %v514_v39  ;;  %660 = vmatpush.msra.mxu0 %v415_v38  ;;  %v797_v39 = vunpack.c.l.bf16 %v2033_v27  ;;  %v442_v38 = vunpack.c.h.bf16 %v1924_v40  ;;  %v434_v40 = vunpack.c.h.bf16 %v1940_v56  ;;  %v426_v56 = vunpack.c.h.bf16 %v1956_v21 }
 0x265   :  { %695 = vmatpush.msra.mxu2 %v437_v51  ;;  %851 = vmatpush.msra.mxu1 %v788_v4  ;;  %v764_v51 = vunpack.c.h.bf16 %v1996_v63  ;;  %v821_v4 = vunpack.c.l.bf16 %v2005_v62  ;;  %v418_v21 = vunpack.c.h.bf16 %v1972_v30  ;;  %v759_v30 = vunpack.c.l.bf16 %v2001_v18 }
 0x266   :  { %641 = vmatpush.msrb.mxu3 %v510_v44  ;;  %661 = vmatpush.msra.mxu0 %v411_v48  ;;  %v2050_v44 = vld [vmem:[#allocation16 + $0x68] sm:$0xff]  ;;  %v810_v18 = vunpack.c.h.bf16 %v2018_v22 }
 0x267   :  { %696 = vmatpush.msra.mxu2 %v433_v58  ;;  %852 = vmatpush.msra.mxu1 %v784_v19  ;;  %v2008_v58 = vld [vmem:[#allocation16 + $0xe8] sm:$0xff]  ;;  %v815_v19 = vunpack.c.l.bf16 %v1886_v55  ;;  %v807_v55 = vunpack.c.l.bf16 %v1902_v15  ;;  %v450_v15 = vunpack.c.h.bf16 %v1908_v23  ;;  %v795_v23 = vunpack.c.l.bf16 %v1926_v41 }
 0x268   :  { %662 = vmatpush.msra.mxu0 %v407_v10  ;;  %642 = vmatpush.msrb.mxu3 %v506_v53  ;;  %v787_v41 = vunpack.c.l.bf16 %v1942_v57  ;;  %v2060_v10 = vld [vmem:[#allocation16 + $0x48] sm:$0xff]  ;;  %v779_v57 = vunpack.c.l.bf16 %v1958_v13  ;;  %v771_v13 = vunpack.c.l.bf16 %v1976_v34  ;;  %v763_v34 = vunpack.c.l.bf16 %v1996_v63  ;;  %v1272_v63 = vld [vmem:[#allocation7] sm:$0xff] }
 0x269   :  { %697 = vmatpush.msra.mxu2 %v429_v5  ;;  %853 = vmatpush.msra.mxu1 %v780_v28  ;;  %v2013_v5 = vld [vmem:[#allocation16 + $0xd8] sm:$0xff]  ;;  %v818_v37 = vunpack.c.h.bf16 %v2008_v58 }
 0x26a   :  { %v813_v42 = vunpack.c.l.bf16 %v2013_v5  ;;  %v2025_v28 = vld [vmem:[#allocation16 + $0xb8] sm:$0xff] }
 0x26b   :  { %698 = vmatpush.msra.mxu2 %v425_v14  ;;  %854 = vmatpush.msra.mxu1 %v776_v29  ;;  %v809_v14 = vunpack.c.l.bf16 %v2018_v22  ;;  %v805_v9 = vunpack.c.l.bf16 %v2025_v28  ;;  %v2040_v29 = vld [vmem:[#allocation16 + $0x88] sm:$0xff] }
 0x26d   :  { %699 = vmatpush.msra.mxu2 %v421_v26  ;;  %855 = vmatpush.msra.mxu1 %v772_v3  ;;  %v799_v26 = vunpack.c.l.bf16 %v1918_v33  ;;  %v791_v33 = vunpack.c.l.bf16 %v1934_v50  ;;  %v793_v3 = vunpack.c.l.bf16 %v2040_v29  ;;  %v783_v50 = vunpack.c.l.bf16 %v1950_v2 }
 0x26e   :  { %v775_v2 = vunpack.c.l.bf16 %v1966_v20  ;;  %v767_v20 = vunpack.c.l.bf16 %v1985_v45  ;;  %v822_v45 = vunpack.c.h.bf16 %v2005_v62  ;;  %v802_v62 = vunpack.c.h.bf16 %v2028_v31 }
 0x26f   :  { %700 = vmatpush.msra.mxu2 %v417_v36  ;;  %856 = vmatpush.msra.mxu1 %v768_v43  ;;  %v2045_v36 = vld [vmem:[#allocation16 + $0x78] sm:$0xff]  ;;  %v785_v43 = vunpack.c.l.bf16 %v2050_v44 }
 0x270   :  { %v789_v48 = vunpack.c.l.bf16 %v2045_v36 }
 0x271   :  { %701 = vmatpush.msra.mxu2 %v413_v49  ;;  %857 = vmatpush.msra.mxu1 %v764_v51  ;;  %v2055_v49 = vld [vmem:[#allocation16 + $0x58] sm:$0xff]  ;;  %v777_v51 = vunpack.c.l.bf16 %v2060_v10 }
 0x272   :  { %v781_v53 = vunpack.c.l.bf16 %v2055_v49  ;;  %v782_v22 = vunpack.c.h.bf16 %v2055_v49  ;;  %v1231_v49 = vld [vmem:[#allocation17 + $0x38] sm:$0xff]  }
 0x273   :  { %702 = vmatpush.msra.mxu2 %v409_v52  ;;  %858 = vmatpush.msra.mxu1 %v760_v61  ;;  %v2065_v52 = vld [vmem:[#allocation16 + $0x38] sm:$0xff]  ;;  %v2070_v61 = vld [vmem:[#allocation16 + $0x28] sm:$0xff] }
 0x274   :  { %859 = vmatmul.f32.vlgmr.msra.gmra.mxu1 %v1716_v46  ;;  %v817_v46 = vunpack.c.l.bf16 %v2008_v58  ;;  %v798_v58 = vunpack.c.h.bf16 %v2033_v27 }
 0x2d7   :  { %v372_v7 = vpop.f32.mrf.mxu2 }
 0x2d8   :  { %583 = vmatmul.f32.vlgmr.msra.gmra.mxu3 %v372_v7  ;;  %603 = vmatmul.f32.vlgmr.msrb.gmra.mxu0 %v372_v7 }
 0x2d9   :  { %623 = vmatmul.f32.vlgmr.msrb.gmra.mxu2 %v372_v7  ;;  %707 = vmatpush.msra.mxu3 %v470_v59  ;;  %v773_v59 = vunpack.c.l.bf16 %v2065_v52 }
 0x2da   :  { %823 = vmatpush.msrb.mxu0 %v819_v8  ;;  %863 = vmatpush.msrb.mxu2 %v821_v4  ;;  %v730_v8 = vld [vmem:[#allocation16 + $0x18] sm:$0xff]  ;;  %v769_v4 = vunpack.c.l.bf16 %v2070_v61 }
 0x2db   :  { %708 = vmatpush.msra.mxu3 %v466_v6  ;;  %v765_v6 = vunpack.c.l.bf16 %v730_v8 }
 0x2dc   :  { %824 = vmatpush.msrb.mxu0 %v815_v19  ;;  %864 = vmatpush.msrb.mxu2 %v817_v46  ;;  %v410_v19 = vunpack.c.h.bf16 %v1994_v60  ;;  %v814_v60 = vunpack.c.h.bf16 %v2013_v5  ;;  %v786_v5 = vunpack.c.h.bf16 %v2050_v44 }
 0x2dd   :  { %709 = vmatpush.msra.mxu3 %v462_v11  ;;  %v806_v11 = vunpack.c.h.bf16 %v2025_v28 }
 0x2de   :  { %825 = vmatpush.msrb.mxu0 %v811_v1  ;;  %865 = vmatpush.msrb.mxu2 %v813_v42  ;;  %v790_v1 = vunpack.c.h.bf16 %v2045_v36  ;;  %v778_v42 = vunpack.c.h.bf16 %v2060_v10 }
 0x2df   :  { %710 = vmatpush.msra.mxu3 %v458_v17  ;;  %v774_v17 = vunpack.c.h.bf16 %v2065_v52 }
 0x2e0   :  { %826 = vmatpush.msrb.mxu0 %v807_v55  ;;  %866 = vmatpush.msrb.mxu2 %v809_v14  ;;  %v770_v55 = vunpack.c.h.bf16 %v2070_v61  ;;  %v766_v14 = vunpack.c.h.bf16 %v730_v8  ;;  %v1229_v61 = vld [vmem:[#allocation17 + $0x28] sm:$0xff]  }
 0x2e1   :  { %643 = vmatmul.f32.vlgmr.msrb.gmra.mxu3 %v372_v7  ;;  %663 = vmatmul.f32.vlgmr.msra.gmra.mxu0 %v1982_v35  ;;  %v728_v7 = vld [vmem:[#allocation16 + $0x8] sm:$0xff] }
 0x2e2   :  { %703 = vmatmul.f32.vlgmr.msra.gmra.mxu2 %v1982_v35  ;;  %711 = vmatpush.msra.mxu3 %v454_v54  ;;  %v761_v46 = vunpack.c.l.bf16 %v728_v7  ;;  %v762_v28 = vunpack.c.h.bf16 %v728_v7  ;;  %v684_v54 = vpop.f32.mrf.mxu1 }
 0x2e3   :  { %827 = vmatpush.msrb.mxu0 %v803_v0  ;;  %867 = vmatpush.msrb.mxu2 %v805_v9 }
 0x2e4   :  { %712 = vmatpush.msra.mxu3 %v450_v15  ;;  %v2099_v15 = vld [vmem:[%s2148_s11] sm:$0xf]  ;;  %s1580_s11 = smov [#allocation20]  }
 0x2e5   :  { %828 = vmatpush.msrb.mxu0 %v799_v26  ;;  %868 = vmatpush.msrb.mxu2 %v801_v12  ;;  %v910_v26 = vperm.slane %v2099_v15, 1  ;;  %v911_v8 = vperm.slane %v2099_v15, 2  ;;  %s1059_s21 = sshll.u32 %s1580_s11, 4  ;;  %s1060_s21 = int_to_ptr.vmem [resolvable:$true] %s1059_s21 }
 0x2e6   :  { %713 = vmatpush.msra.mxu3 %v446_v24 }
 0x2e7   :  { %829 = vmatpush.msrb.mxu0 %v795_v23  ;;  %869 = vmatpush.msrb.mxu2 %v797_v39 }
 0x2e8   :  { %714 = vmatpush.msra.mxu3 %v442_v38 }
 0x2e9   :  { %830 = vmatpush.msrb.mxu0 %v791_v33  ;;  %870 = vmatpush.msrb.mxu2 %v793_v3  ;;  %v909_v3 = vperm.slane %v2099_v15, 0 }
 0x2ea   :  { %715 = vmatpush.msra.mxu3 %v438_v32 }
 0x2eb   :  { %831 = vmatpush.msrb.mxu0 %v787_v41  ;;  %871 = vmatpush.msrb.mxu2 %v789_v48 }
 0x2ec   :  { %716 = vmatpush.msra.mxu3 %v434_v40 }
 0x2ed   :  { %832 = vmatpush.msrb.mxu0 %v783_v50  ;;  %872 = vmatpush.msrb.mxu2 %v785_v43  ;;  %v1210_v43 = vunpack.c.h.bf16 %v1231_v49 }
 0x2ee   :  { %717 = vmatpush.msra.mxu3 %v430_v47  ;;  %v1209_v47 = vunpack.c.l.bf16 %v1231_v49 }
 0x2ef   :  { %833 = vmatpush.msrb.mxu0 %v779_v57  ;;  %873 = vmatpush.msrb.mxu2 %v781_v53  ;;  %v1230_v57 = vld [vmem:[#allocation17 + $0x30] sm:$0xff]  }
 0x2f0   :  { %718 = vmatpush.msra.mxu3 %v426_v56  ;;  %v1206_v53 = vunpack.c.h.bf16 %v1230_v57 }
 0x2f1   :  { %834 = vmatpush.msrb.mxu0 %v775_v2  ;;  %874 = vmatpush.msrb.mxu2 %v777_v51  ;;  %v860_v9 = vpop.f32.mrf.mxu1  ;;  %v1205_v2 = vunpack.c.l.bf16 %v1230_v57 }
 0x2f2   :  { %719 = vmatpush.msra.mxu3 %v422_v16 }
 0x2f3   :  { %835 = vmatpush.msrb.mxu0 %v771_v13  ;;  %875 = vmatpush.msrb.mxu2 %v773_v59  ;;  %v1202_v59 = vunpack.c.h.bf16 %v1229_v61 }
 0x2f4   :  { %720 = vmatpush.msra.mxu3 %v418_v21 }
 0x2f5   :  { %836 = vmatpush.msrb.mxu0 %v767_v20  ;;  %876 = vmatpush.msrb.mxu2 %v769_v4  ;;  %v1201_v20 = vunpack.c.l.bf16 %v1229_v61 }
 0x2f6   :  { %721 = vmatpush.msra.mxu3 %v414_v25  ;;  %v1228_v25 = vld [vmem:[#allocation17 + $0x20] sm:$0xff]  }
 0x2f7   :  { %837 = vmatpush.msrb.mxu0 %v763_v34  ;;  %877 = vmatpush.msrb.mxu2 %v765_v6  ;;  %v1198_v7 = vunpack.c.h.bf16 %v1228_v25 }
 0x2f8   :  { %722 = vmatpush.msra.mxu3 %v410_v19 }
 0x2f9   :  { %838 = vmatpush.msrb.mxu0 %v759_v30  ;;  %878 = vmatpush.msrb.mxu2 %v761_v46  ;;  %v1197_v30 = vunpack.c.l.bf16 %v1228_v25 }
 0x2fa   :  { %723 = vmatmul.f32.vlgmr.msra.gmra.mxu3 %v1982_v35  ;;  %839 = vmatmul.f32.vlgmr.msrb.gmra.mxu0 %v1272_v63  ;;  %v794_v35 = vunpack.c.h.bf16 %v2040_v29 }
 0x2fb   :  { %879 = vmatmul.f32.vlgmr.msrb.gmra.mxu2 %v1272_v63  ;;  %883 = vmatpush.msrb.mxu3 %v822_v45 }
 0x2fc   :  { %1020 = vmatpush.msra.mxu0 %v1210_v43 }
 0x2fd   :  { %884 = vmatpush.msrb.mxu3 %v818_v37  ;;  %v1227_v37 = vld [vmem:[#allocation17 + $0x18] sm:$0xff]  }
 0x2fe   :  { %1021 = vmatpush.msra.mxu0 %v1209_v47 }
 0x2ff   :  { %885 = vmatpush.msrb.mxu3 %v814_v60  ;;  %v1194_v60 = vunpack.c.h.bf16 %v1227_v37 }
 0x300   :  { %1022 = vmatpush.msra.mxu0 %v1206_v53 }
 0x301   :  { %886 = vmatpush.msrb.mxu3 %v810_v18 }
 0x302   :  { %1023 = vmatpush.msra.mxu0 %v1205_v2 }
 0x303   :  { %887 = vmatpush.msrb.mxu3 %v806_v11 }
 0x304   :  { %1024 = vmatpush.msra.mxu0 %v1202_v59 }
 0x305   :  { %888 = vmatpush.msrb.mxu3 %v802_v62 }
 0x306   :  { %1025 = vmatpush.msra.mxu0 %v1201_v20 }
 0x307   :  { %889 = vmatpush.msrb.mxu3 %v798_v58 }
 0x308   :  { %1026 = vmatpush.msra.mxu0 %v1198_v7 }
 0x309   :  { %890 = vmatpush.msrb.mxu3 %v794_v35  ;;  %v1193_v35 = vunpack.c.l.bf16 %v1227_v37 }
 0x30a   :  { %1027 = vmatpush.msra.mxu0 %v1197_v30 }
 0x30b   :  { %891 = vmatpush.msrb.mxu3 %v790_v1 }
 0x30c   :  { %1028 = vmatpush.msra.mxu0 %v1194_v60 }
 0x30d   :  { %892 = vmatpush.msrb.mxu3 %v786_v5 }
 0x30e   :  { %1029 = vmatpush.msra.mxu0 %v1193_v35 }
 0x30f   :  { %893 = vmatpush.msrb.mxu3 %v782_v22 }
 0x311   :  { %894 = vmatpush.msrb.mxu3 %v778_v42  ;;  %v1226_v42 = vld [vmem:[#allocation17 + $0x10] sm:$0xff]  }
 0x313   :  { %895 = vmatpush.msrb.mxu3 %v774_v17 }
 0x315   :  { %896 = vmatpush.msrb.mxu3 %v770_v55  ;;  %v1190_v55 = vunpack.c.h.bf16 %v1226_v42 }
 0x317   :  { %897 = vmatpush.msrb.mxu3 %v766_v14  ;;  %1030 = vmatpush.msra.mxu0 %v1190_v55 }
 0x319   :  { %898 = vmatpush.msrb.mxu3 %v762_v28 }
 0x31a   :  { %899 = vmatmul.f32.vlgmr.msrb.gmra.mxu3 %v1272_v63 }
 0x355   :  { %v604_v31 = vpop.f32.mrf.mxu0 }
 0x356   :  { %v685_v0 = vadd.f32 %v684_v54, %v604_v31  ;;  %v187_v54 = vld [vmem:[#allocation8] sm:$0xff] }
 0x358   :  { %v904_v27 = vadd.f32 %v860_v9, %v685_v0  ;;  %v1189_v9 = vunpack.c.l.bf16 %v1226_v42 }
 0x35a   :  { %v918_v12 = vadd.f32 %v910_v26, %v904_v27  ;;  %v1225_v26 = vld [vmem:[#allocation17 + $0x8] sm:$0xff]   ;;  %1031 = vmatpush.msra.mxu0 %v1189_v9 }
 0x35b   :  { %v584_v36 = vpop.f32.mrf.mxu3 }
 0x35c   :  { %v1113_v24 = vmul.f32 -1.442695, %v918_v12  ;;  %v624_v39 = vpop.f32.mrf.mxu2 }
 0x35e   :  { %1256 = vpow2.f32 %v1113_v24  ;;  %v664_v29 = vpop.f32.mrf.mxu0 }
 0x35f   :  { %v665_v33 = vadd.f32 %v664_v29, %v584_v36  ;;  %v1186_v29 = vunpack.c.h.bf16 %v1225_v26  ;;  %v1185_v36 = vunpack.c.l.bf16 %v1225_v26 }
 0x361   :  { %1032 = vmatpush.msra.mxu0 %v1186_v29 }
 0x363   :  { %1033 = vmatpush.msra.mxu0 %v1185_v36 }
 0x364   :  { %v1257_v23 = vpop.eup %1256  ;;  %v644_v6 = vpop.f32.mrf.mxu3 }
 0x365   :  { %v2102_v38 = vadd.f32 1.0, %v1257_v23  ;;  %v704_v40 = vpop.f32.mrf.mxu2  ;;  %v1180_v23 = vld [vmem:[#allocation17] sm:$0xff]  }
 0x366   :  { %v705_v13 = vadd.f32 %v704_v40, %v624_v39 }
 0x367   :  { %1258 = vrcp.f32 %v2102_v38  ;;  %v955_v63 = vand.u32 2147483648, %v2102_v38  ;;  %vm949_vm4 = vweird.f32 %v2102_v38  ;;  %v953_v11 = vand.u32 2147483647, %v2102_v38 }
 0x369   :  { %v956_v17 = vor.u32 1.1754944e-38, %v955_v63  ;;  %vm954_vm8 = vcmp.eq.f32.partialorder %v953_v11, 8.507059e+37 }
 0x36d   :  { %v2106_v50 = vpop.eup %1258 }
 0x36e   :  { %v945_v10 = vmul.f32 %v2106_v50, %v2102_v38  ;;  %vm950_vm3 = vweird.f32 %v2106_v50 }
 0x36f   :  { %vm2117_vm5 = vmor %vm949_vm4, %vm950_vm3 }
 0x370   :  { %v946_v51 = vsub.f32 1.0, %v945_v10 }
 0x372   :  { %v947_v4 = vmul.f32 %v2106_v50, %v946_v51 }
 0x374   :  { %v948_v45 = vadd.f32 %v2106_v50, %v947_v4 }
 0x376   :  { %v952_v22 = vsel %vm2117_vm5, %v2106_v50, %v948_v45 }
 0x377   :  { %v840_v32 = vpop.f32.mrf.mxu0  ;;  %v957_v0 = vsel %vm954_vm8, %v956_v17, %v952_v22 }
 0x378   :  { %v903_v44 = vadd.f32 %v840_v32, %v665_v33  ;;  %v979_v39 = vmul.f32 %v957_v0, %v187_v54 }
 0x37a   :  { %v917_v41 = vadd.f32 %v909_v3, %v903_v44  ;;  %v1182_v3 = vunpack.c.h.bf16 %v1180_v23  ;;  %v912_v44 = vperm.slane %v2099_v15, 3 }
 0x37c   :  { %v1112_v48 = vmul.f32 -1.442695, %v917_v41  ;;  %v1181_v41 = vunpack.c.l.bf16 %v1180_v23  ;;  %1034 = vmatpush.msra.mxu0 %v1182_v3 }
 0x37d   :  { %v724_v28 = vpop.f32.mrf.mxu3 }
 0x37e   :  { %1260 = vpow2.f32 %v1112_v48  ;;  %v880_v16 = vpop.f32.mrf.mxu2  ;;  %v725_v32 = vadd.f32 %v724_v28, %v644_v6  ;;  %1035 = vmatpush.msra.mxu0 %v1181_v41 }
 0x37f   :  { %v905_v21 = vadd.f32 %v880_v16, %v705_v13 }
 0x381   :  { %v919_v19 = vadd.f32 %v911_v8, %v905_v21  ;;  %v1251_v21 = vld [vmem:[%s2150_s13] ss:$0 sm:$0xff] }
 0x384   :  { %v1261_v56 = vpop.eup %1260 }
 0x385   :  { %v924_v52 = vadd.f32 1.0, %v1261_v56 }
 0x387   :  { %1262 = vrcp.f32 %v924_v52  ;;  %v936_v58 = vand.u32 2147483648, %v924_v52  ;;  %v934_v5 = vand.u32 2147483647, %v924_v52  ;;  %vm930_vm7 = vweird.f32 %v924_v52 }
 0x388   :  { %1264 = vtanh.f32 %v919_v19 }
 0x389   :  { %v937_v31 = vor.u32 1.1754944e-38, %v936_v58  ;;  %vm935_vm10 = vcmp.eq.f32.partialorder %v934_v5, 8.507059e+37 }
 0x38d   :  { %v1263_v34 = vpop.eup %1262 }
 0x38e   :  { %v926_v46 = vmul.f32 %v1263_v34, %v924_v52  ;;  %vm931_vm6 = vweird.f32 %v1263_v34  ;;  %v1265_v12 = vpop.eup %1264 }
 0x38f   :  { %vm932_vm9 = vmor %vm930_vm7, %vm931_vm6 }
 0x390   :  { %v927_v18 = vsub.f32 1.0, %v926_v46 }
 0x392   :  { %v928_v1 = vmul.f32 %v1263_v34, %v927_v18 }
 0x394   :  { %v929_v14 = vadd.f32 %v1263_v34, %v928_v1 }
 0x396   :  { %v933_v27 = vsel %vm932_vm9, %v1263_v34, %v929_v14 }
 0x397   :  { %v938_v24 = vsel %vm935_vm10, %v937_v31, %v933_v27 }
 0x398   :  { %v980_v38 = vmul.f32 %v1265_v12, %v938_v24 }
 0x39a   :  { %v981_v33 = vadd.f32 %v980_v38, %v979_v39 }
 0x39c   :  { %1042 = vst [vmem:[#allocation22] sm:$0xff] %v981_v33 }
 0x39d   :  { %v900_v48 = vpop.f32.mrf.mxu3 }
 0x39e   :  { %v906_v40 = vadd.f32 %v900_v48, %v725_v32 }
 0x3a0   :  { %v920_v49 = vadd.f32 %v912_v44, %v906_v40 }
 0x3a2   :  { %v1114_v50 = vmul.f32 -1.442695, %v920_v49 }
 0x3a4   :  { %1266 = vpow2.f32 %v1114_v50 }
 0x3aa   :  { %v1267_v43 = vpop.eup %1266 }
 0x3ab   :  { %v963_v47 = vadd.f32 1.0, %v1267_v43 }
 0x3ad   :  { %1268 = vrcp.f32 %v963_v47  ;;  %v975_v56 = vand.u32 2147483648, %v963_v47  ;;  %v973_v15 = vand.u32 2147483647, %v963_v47  ;;  %vm969_vm12 = vweird.f32 %v963_v47 }
 0x3ae   :  { %1270 = vtanh.f32 %v981_v33 }
 0x3af   :  { %v976_v51 = vor.u32 1.1754944e-38, %v975_v56  ;;  %vm974_vm14 = vcmp.eq.f32.partialorder %v973_v15, 8.507059e+37 }
 0x3b3   :  { %v1269_v10 = vpop.eup %1268 }
 0x3b4   :  { %v965_v57 = vmul.f32 %v1269_v10, %v963_v47  ;;  %vm970_vm11 = vweird.f32 %v1269_v10  ;;  %v1271_v61 = vpop.eup %1270 }
 0x3b5   :  { %vm971_vm13 = vmor %vm969_vm12, %vm970_vm11 }
 0x3b6   :  { %v966_v53 = vsub.f32 1.0, %v965_v57 }
 0x3b8   :  { %v967_v52 = vmul.f32 %v1269_v10, %v966_v53 }
 0x3ba   :  { %v968_v2 = vadd.f32 %v1269_v10, %v967_v52 }
 0x3bc   :  { %v972_v16 = vsel %vm971_vm13, %v1269_v10, %v968_v2 }
 0x3bd   :  { %v977_v13 = vsel %vm974_vm14, %v976_v51, %v972_v16 }
 0x3be   :  { %v983_v59 = vmul.f32 %v1271_v61, %v977_v13 }
 0x3c0   :  { %1036 = vmatmul.f32.vlgmr.msra.gmra.mxu0 %v983_v59  ;;  %1041 = vst [vmem:[#allocation20] sm:$0xff] %v983_v59 }
 0x3c1   :  { %1064 = dma.vmem_to_hbm [thread:$0]  %s1060_s21, 128, %s1062_s28, [#allocation21]  }
 0x3c2   :  { %1075 = dma.vmem_to_hbm [thread:$0]  %s1071_s5, 128, %s1073_s30, [#allocation21]  }
 0x43d   :  { %v1037_v8 = vpop.f32.mrf.mxu0 }
 0x43e   :  { %v1038_v20 = vadd.f32 %v1251_v21, %v1037_v8 }
 0x440   :  { %1040 = vst [vmem:[#allocation19] sm:$0xff] %v1038_v20 }
 0x441   :  { %1053 = dma.vmem_to_hbm [thread:$0]  %s1049_s15, 128, %s1051_s0, [#allocation5]  }
 0x442   :  { %1561 = dma.done.wait [#allocation5], 128  }
 0x443   :  { %1562 = vsyncadd [#allocation5], 4294967168 }
 0x444   :  { %1563 = dma.done.wait [#allocation21], 256  }
 0x445   :  { %1564 = vsyncadd [#allocation21], 4294967040 }
 0x446   :  { %1088 = vsyncpa [#allocation4], 1 }
 0x447   :  { %1089 = vsyncpa [#allocation9], 1 }
 0x448   :  { %1090 = vsyncpa [#allocation12], 1 }
 0x449   :  { %1091 = vsyncpa [#allocation15], 1 }
 0x44a   :  { %1092 = vsyncpa [#allocation18], 1 }
 0x44b   :  { %1093 = vsyncpa [#allocation5], 1 }
 0x44c   :  { %1094 = vsyncpa [#allocation21], 1 }
 0x44d   :  { %1095 = vsyncpa [#allocation6], 1 }

</bundles_post_ra>
